<compile_context>
chip_gen: v6e
topology: v6e:2x2x1
jax: 0.10.0
libtpu: 0.0.40
codegen_flags: <defaults>
</compile_context>

<pallas_src>
import functools
import math

import jax
import jax.numpy as jnp
from jax.experimental import pallas as pl
from jax.experimental.pallas import tpu as pltpu


def _radial_flows_kernel(alpha_ref, beta_ref, z_ref, x0_ref,
                         zout_ref, logj_ref, *, num_classes, flow_length, dim):
    """One grid step = one tile of N nodes (lane axis).

    alpha_ref, beta_ref : SMEM (C*L,) f32, indexed by c*L + l
    z_ref               : VMEM (dim, tile_n) f32    -- dim on sublanes, N on lanes
    x0_ref              : VMEM (dim, C*L)   f32     -- column c*L + l = x0 of flow l, class c
    zout_ref            : VMEM (C, dim, tile_n) f32 -- lane-dense output
    logj_ref            : VMEM (C, tile_n)   f32    -- lane-dense output
    """
    z0 = z_ref[...]                                   # (dim, tile_n)
    tile_n = z0.shape[1]

    for c in range(num_classes):                      # static unroll (C small)
        z = z0                                        # z.repeat(c,1,1): reuse same tile
        logj = jnp.zeros((1, tile_n), jnp.float32)
        for l in range(flow_length):                  # static unroll (L small)
            idx = c * flow_length + l
            alpha = alpha_ref[idx]                    # SMEM scalar
            beta = beta_ref[idx]                      # SMEM scalar
            x0_col = x0_ref[:, pl.ds(idx, 1)]         # (dim, 1), lane-broadcast below

            diff = z - x0_col                         # (dim, tile_n)
            r = jnp.sqrt(jnp.sum(diff * diff, axis=0, keepdims=True))   # (1, tile_n) XLU reduce
            h = 1.0 / (alpha + r)                     # (1, tile_n)
            beta_h = beta * h
            # beta_h + beta*h_prime*r == alpha*beta*h^2 (same value, fewer muls,
            # better conditioned when beta ~= -alpha and r -> 0)
            logj = logj + (dim - 1) * jnp.log1p(beta_h) \
                        + jnp.log1p(alpha * beta * h * h)
            z = z + beta_h * diff                     # sublane-broadcast of beta_h

        zout_ref[c, :, :] = z
        logj_ref[pl.ds(c, 1), :] = logj


def _pick_n_tile(n, dim, num_classes):
    """Lane-dense N tile: multiple of 128 if possible, sized to stay well inside
    the scoped-VMEM default on all generations (incl. v7x's 64 MiB physical)."""
    if n % 128 != 0:
        return n                                      # full-array block (small N)
    budget = 8 * 1024 * 1024                          # tiles + double buffering
    for t in (2048, 1024, 512, 256, 128):
        if n % t == 0:
            per_step = 2 * 4 * t * (dim + num_classes * dim + num_classes)
            if per_step <= budget:
                return t
    return 128


def batched_normalizing_flow_forward(z, x0, alpha_prime, beta_prime):
    """Forward pass of BatchedNormalizingFlowDensity.

    Args:
      z           : (N, dim) float32
      x0          : (L, C, dim) float32   (flow_length stacked Radial.x0)
      alpha_prime : (L, C) float32
      beta_prime  : (L, C) float32
    Returns:
      z_out             : (C, N, dim) float32
      sum_log_jacobians : (C, N) float32
    """
    L, C, dim = x0.shape
    N = z.shape[0]

    # parameter setup (glue): softplus re-parameterization, flat per-(class,flow) layout
    alpha = jax.nn.softplus(alpha_prime)                               # (L, C)
    beta = -alpha + jax.nn.softplus(beta_prime)                        # (L, C)
    alpha_flat = jnp.transpose(alpha).reshape(-1).astype(jnp.float32)  # (C*L,), idx = c*L + l
    beta_flat = jnp.transpose(beta).reshape(-1).astype(jnp.float32)    # (C*L,)
    # x0 as (dim, C*L): column c*L + l holds x0[l, c, :]
    x0_t = jnp.transpose(x0, (2, 1, 0)).reshape(dim, C * L).astype(jnp.float32)
    # z as (dim, N): N on the lane axis
    z_t = jnp.transpose(z).astype(jnp.float32)

    tile_n = _pick_n_tile(N, dim, C)
    grid = (N // tile_n,)

    kernel = functools.partial(_radial_flows_kernel,
                               num_classes=C, flow_length=L, dim=dim)

    cost = pl.CostEstimate(
        flops=C * L * N * (4 * dim + 12),
        transcendentals=C * L * N * 4,                 # sqrt + recip + 2x log1p
        bytes_accessed=4 * (N * dim + dim * C * L + 2 * C * L
                            + C * N * dim + C * N),
    )

    z_out_t, logj = pl.pallas_call(
        kernel,
        out_shape=(
            jax.ShapeDtypeStruct((C, dim, N), jnp.float32),
            jax.ShapeDtypeStruct((C, N), jnp.float32),
        ),
        grid_spec=pl.GridSpec(
            grid=grid,
            in_specs=[
                pl.BlockSpec(memory_space=pltpu.MemorySpace.SMEM),    # alpha (C*L,)
                pl.BlockSpec(memory_space=pltpu.MemorySpace.SMEM),    # beta  (C*L,)
                pl.BlockSpec((dim, tile_n), lambda i: (0, i)),        # z tile (lane-dense)
                pl.BlockSpec((dim, C * L), lambda i: (0, 0)),         # x0 (tiny, same every step)
            ],
            out_specs=(
                pl.BlockSpec((C, dim, tile_n), lambda i: (0, 0, i)),  # z_out, lane-dense
                pl.BlockSpec((C, tile_n), lambda i: (0, i)),          # sum log|det J|
            ),
        ),
        compiler_params=pltpu.CompilerParams(
            dimension_semantics=("parallel",)),
        cost_estimate=cost,
    )(alpha_flat, beta_flat, z_t, x0_t)

    z_out = jnp.transpose(z_out_t, (0, 2, 1))          # (C, N, dim) as in the PyTorch forward
    return z_out, logj


def _reference_forward(z, x0, alpha_prime, beta_prime):
    """Pure-JAX replica of the PyTorch forward (for verification)."""
    L, C, dim = x0.shape
    alpha = jax.nn.softplus(alpha_prime)
    beta = -alpha + jax.nn.softplus(beta_prime)
    zc = jnp.broadcast_to(z[None], (C,) + z.shape)            # z.repeat(c, 1, 1)
    sum_logj = jnp.zeros((C, z.shape[0]), jnp.float32)
    for l in range(L):
        diff = zc - x0[l][:, None, :]
        r = jnp.linalg.norm(diff, axis=-1)
        h = 1.0 / (alpha[l][:, None] + r)
        h_prime = -h ** 2
        beta_h = beta[l][:, None] * h
        sum_logj = sum_logj + (dim - 1) * jnp.log1p(beta_h) \
                            + jnp.log1p(beta_h + beta[l][:, None] * h_prime * r)
        zc = zc + beta_h[:, :, None] * diff
    return zc, sum_logj


if __name__ == "__main__":
    # Small shapes consistent with the module: C classes, flow dim, flow_length flows.
    C, DIM, FLOW_LENGTH, N = 4, 16, 3, 64

    key = jax.random.PRNGKey(0)
    k_z, k_x0, k_a, k_b = jax.random.split(key, 4)

    # Deterministic parameter init mirroring Radial.reset_parameters:
    # uniform(-stdv, stdv) with stdv = 1/sqrt(dim).
    stdv = 1.0 / math.sqrt(DIM)
    x0 = jax.random.uniform(k_x0, (FLOW_LENGTH, C, DIM),
                            minval=-stdv, maxval=stdv, dtype=jnp.float32)
    alpha_prime = jax.random.uniform(k_a, (FLOW_LENGTH, C),
                                     minval=-stdv, maxval=stdv, dtype=jnp.float32)
    beta_prime = jax.random.uniform(k_b, (FLOW_LENGTH, C),
                                    minval=-stdv, maxval=stdv, dtype=jnp.float32)

    z = jax.random.normal(k_z, (N, DIM), dtype=jnp.float32)

    z_out, sum_logj = batched_normalizing_flow_forward(z, x0, alpha_prime, beta_prime)
    jax.block_until_ready((z_out, sum_logj))

    z_ref, logj_ref = _reference_forward(z, x0, alpha_prime, beta_prime)
    assert jnp.allclose(z_out, z_ref, atol=1e-5, rtol=1e-5)
    assert jnp.allclose(sum_logj, logj_ref, atol=1e-5, rtol=1e-5)

    print("KERNEL_OK")
</pallas_src>

<mosaic_0001>
module attributes {stable_mosaic.version = 11 : i64} {
  func.func @_radial_flows_kernel(%arg0: i32, %arg1: memref<12xf32, #tpu.memory_space<smem>>, %arg2: memref<12xf32, #tpu.memory_space<smem>>, %arg3: memref<16x64xf32, #tpu.memory_space<vmem>>, %arg4: memref<16x12xf32, #tpu.memory_space<vmem>>, %arg5: memref<4x16x64xf32, #tpu.memory_space<vmem>>, %arg6: memref<4x64xf32, #tpu.memory_space<vmem>>) attributes {dimension_semantics = [#tpu.dimension_semantics<parallel>], iteration_bounds = array<i64: 1>, scalar_prefetch = 0 : i64, scratch_operands = 0 : i64, tpu.core_type = #tpu.core_type<tc>, window_params = [{transform_indices = @transform_0, window_bounds = array<i64: 12>}, {transform_indices = @transform_1, window_bounds = array<i64: 12>}, {transform_indices = @transform_2, window_bounds = array<i64: 16, 64>}, {pipeline_mode = #tpu.pipeline_mode<synchronous>, transform_indices = @transform_3, window_bounds = array<i64: 16, 12>}, {transform_indices = @transform_4, window_bounds = array<i64: 4, 16, 64>}, {transform_indices = @transform_5, window_bounds = array<i64: 4, 64>}]} {
    %c0 = arith.constant 0 : index
    %c0_0 = arith.constant 0 : index
    %0 = vector.load %arg3[%c0, %c0_0] : memref<16x64xf32, #tpu.memory_space<vmem>>, vector<16x64xf32>
    %cst = arith.constant 0.000000e+00 : f32
    %1 = vector.broadcast %cst : f32 to vector<1x64xf32>
    %c0_1 = arith.constant 0 : index
    %2 = memref.load %arg1[%c0_1] : memref<12xf32, #tpu.memory_space<smem>>
    %c0_2 = arith.constant 0 : index
    %3 = memref.load %arg2[%c0_2] : memref<12xf32, #tpu.memory_space<smem>>
    %c0_3 = arith.constant 0 : index
    %c0_4 = arith.constant 0 : index
    %4 = vector.load %arg4[%c0_3, %c0_4] : memref<16x12xf32, #tpu.memory_space<vmem>>, vector<16x1xf32>
    %5 = vector.broadcast %4 : vector<16x1xf32> to vector<16x64xf32>
    %6 = arith.subf %0, %5 : vector<16x64xf32>
    %7 = arith.mulf %6, %6 : vector<16x64xf32>
    %cst_5 = arith.constant dense<0.000000e+00> : vector<64xf32>
    %8 = vector.multi_reduction <add>, %7, %cst_5 [0] : vector<16x64xf32> to vector<64xf32>
    %9 = vector.shape_cast %8 : vector<64xf32> to vector<1x64xf32>
    %10 = math.sqrt %9 : vector<1x64xf32>
    %11 = vector.broadcast %2 : f32 to vector<1x64xf32>
    %12 = arith.addf %11, %10 : vector<1x64xf32>
    %cst_6 = arith.constant 1.000000e+00 : f32
    %13 = vector.broadcast %cst_6 : f32 to vector<1x64xf32>
    %14 = arith.divf %13, %12 : vector<1x64xf32>
    %15 = vector.broadcast %3 : f32 to vector<1x64xf32>
    %16 = arith.mulf %15, %14 : vector<1x64xf32>
    %17 = math.log1p %16 : vector<1x64xf32>
    %cst_7 = arith.constant 1.500000e+01 : f32
    %18 = vector.broadcast %cst_7 : f32 to vector<1x64xf32>
    %19 = arith.mulf %18, %17 : vector<1x64xf32>
    %20 = arith.addf %1, %19 : vector<1x64xf32>
    %21 = arith.mulf %2, %3 : f32
    %22 = vector.broadcast %21 : f32 to vector<1x64xf32>
    %23 = arith.mulf %22, %14 : vector<1x64xf32>
    %24 = arith.mulf %23, %14 : vector<1x64xf32>
    %25 = math.log1p %24 : vector<1x64xf32>
    %26 = arith.addf %20, %25 : vector<1x64xf32>
    %27 = vector.broadcast %16 : vector<1x64xf32> to vector<16x64xf32>
    %28 = arith.mulf %27, %6 : vector<16x64xf32>
    %29 = arith.addf %0, %28 : vector<16x64xf32>
    %c1 = arith.constant 1 : index
    %30 = memref.load %arg1[%c1] : memref<12xf32, #tpu.memory_space<smem>>
    %c1_8 = arith.constant 1 : index
    %31 = memref.load %arg2[%c1_8] : memref<12xf32, #tpu.memory_space<smem>>
    %c0_9 = arith.constant 0 : index
    %c1_10 = arith.constant 1 : index
    %32 = vector.load %arg4[%c0_9, %c1_10] : memref<16x12xf32, #tpu.memory_space<vmem>>, vector<16x1xf32>
    %33 = vector.broadcast %32 : vector<16x1xf32> to vector<16x64xf32>
    %34 = arith.subf %29, %33 : vector<16x64xf32>
    %35 = arith.mulf %34, %34 : vector<16x64xf32>
    %cst_11 = arith.constant dense<0.000000e+00> : vector<64xf32>
    %36 = vector.multi_reduction <add>, %35, %cst_11 [0] : vector<16x64xf32> to vector<64xf32>
    %37 = vector.shape_cast %36 : vector<64xf32> to vector<1x64xf32>
    %38 = math.sqrt %37 : vector<1x64xf32>
    %39 = vector.broadcast %30 : f32 to vector<1x64xf32>
    %40 = arith.addf %39, %38 : vector<1x64xf32>
    %cst_12 = arith.constant 1.000000e+00 : f32
    %41 = vector.broadcast %cst_12 : f32 to vector<1x64xf32>
    %42 = arith.divf %41, %40 : vector<1x64xf32>
    %43 = vector.broadcast %31 : f32 to vector<1x64xf32>
    %44 = arith.mulf %43, %42 : vector<1x64xf32>
    %45 = math.log1p %44 : vector<1x64xf32>
    %cst_13 = arith.constant 1.500000e+01 : f32
    %46 = vector.broadcast %cst_13 : f32 to vector<1x64xf32>
    %47 = arith.mulf %46, %45 : vector<1x64xf32>
    %48 = arith.addf %26, %47 : vector<1x64xf32>
    %49 = arith.mulf %30, %31 : f32
    %50 = vector.broadcast %49 : f32 to vector<1x64xf32>
    %51 = arith.mulf %50, %42 : vector<1x64xf32>
    %52 = arith.mulf %51, %42 : vector<1x64xf32>
    %53 = math.log1p %52 : vector<1x64xf32>
    %54 = arith.addf %48, %53 : vector<1x64xf32>
    %55 = vector.broadcast %44 : vector<1x64xf32> to vector<16x64xf32>
    %56 = arith.mulf %55, %34 : vector<16x64xf32>
    %57 = arith.addf %29, %56 : vector<16x64xf32>
    %c2 = arith.constant 2 : index
    %58 = memref.load %arg1[%c2] : memref<12xf32, #tpu.memory_space<smem>>
    %c2_14 = arith.constant 2 : index
    %59 = memref.load %arg2[%c2_14] : memref<12xf32, #tpu.memory_space<smem>>
    %c0_15 = arith.constant 0 : index
    %c2_16 = arith.constant 2 : index
    %60 = vector.load %arg4[%c0_15, %c2_16] : memref<16x12xf32, #tpu.memory_space<vmem>>, vector<16x1xf32>
    %61 = vector.broadcast %60 : vector<16x1xf32> to vector<16x64xf32>
    %62 = arith.subf %57, %61 : vector<16x64xf32>
    %63 = arith.mulf %62, %62 : vector<16x64xf32>
    %cst_17 = arith.constant dense<0.000000e+00> : vector<64xf32>
    %64 = vector.multi_reduction <add>, %63, %cst_17 [0] : vector<16x64xf32> to vector<64xf32>
    %65 = vector.shape_cast %64 : vector<64xf32> to vector<1x64xf32>
    %66 = math.sqrt %65 : vector<1x64xf32>
    %67 = vector.broadcast %58 : f32 to vector<1x64xf32>
    %68 = arith.addf %67, %66 : vector<1x64xf32>
    %cst_18 = arith.constant 1.000000e+00 : f32
    %69 = vector.broadcast %cst_18 : f32 to vector<1x64xf32>
    %70 = arith.divf %69, %68 : vector<1x64xf32>
    %71 = vector.broadcast %59 : f32 to vector<1x64xf32>
    %72 = arith.mulf %71, %70 : vector<1x64xf32>
    %73 = math.log1p %72 : vector<1x64xf32>
    %cst_19 = arith.constant 1.500000e+01 : f32
    %74 = vector.broadcast %cst_19 : f32 to vector<1x64xf32>
    %75 = arith.mulf %74, %73 : vector<1x64xf32>
    %76 = arith.addf %54, %75 : vector<1x64xf32>
    %77 = arith.mulf %58, %59 : f32
    %78 = vector.broadcast %77 : f32 to vector<1x64xf32>
    %79 = arith.mulf %78, %70 : vector<1x64xf32>
    %80 = arith.mulf %79, %70 : vector<1x64xf32>
    %81 = math.log1p %80 : vector<1x64xf32>
    %82 = arith.addf %76, %81 : vector<1x64xf32>
    %83 = vector.broadcast %72 : vector<1x64xf32> to vector<16x64xf32>
    %84 = arith.mulf %83, %62 : vector<16x64xf32>
    %85 = arith.addf %57, %84 : vector<16x64xf32>
    %c0_20 = arith.constant 0 : index
    %c0_21 = arith.constant 0 : index
    %c0_22 = arith.constant 0 : index
    %86 = vector.load %arg5[%c0_20, %c0_21, %c0_22] : memref<4x16x64xf32, #tpu.memory_space<vmem>>, vector<1x16x64xf32>
    %87 = vector.shape_cast %86 : vector<1x16x64xf32> to vector<16x64xf32>
    %88 = vector.shape_cast %85 : vector<16x64xf32> to vector<1x16x64xf32>
    tpu.vector_store %arg5[%c0_20, %c0_21, %c0_22], %88 {strides = array<i32>} : memref<4x16x64xf32, #tpu.memory_space<vmem>>, vector<1x16x64xf32>,
    %c0_23 = arith.constant 0 : index
    %c0_24 = arith.constant 0 : index
    %89 = vector.load %arg6[%c0_23, %c0_24] : memref<4x64xf32, #tpu.memory_space<vmem>>, vector<1x64xf32>
    tpu.vector_store %arg6[%c0_23, %c0_24], %82 {strides = array<i32>} : memref<4x64xf32, #tpu.memory_space<vmem>>, vector<1x64xf32>,
    %cst_25 = arith.constant 0.000000e+00 : f32
    %90 = vector.broadcast %cst_25 : f32 to vector<1x64xf32>
    %c3 = arith.constant 3 : index
    %91 = memref.load %arg1[%c3] : memref<12xf32, #tpu.memory_space<smem>>
    %c3_26 = arith.constant 3 : index
    %92 = memref.load %arg2[%c3_26] : memref<12xf32, #tpu.memory_space<smem>>
    %c0_27 = arith.constant 0 : index
    %c3_28 = arith.constant 3 : index
    %93 = vector.load %arg4[%c0_27, %c3_28] : memref<16x12xf32, #tpu.memory_space<vmem>>, vector<16x1xf32>
    %94 = vector.broadcast %93 : vector<16x1xf32> to vector<16x64xf32>
    %95 = arith.subf %0, %94 : vector<16x64xf32>
    %96 = arith.mulf %95, %95 : vector<16x64xf32>
    %cst_29 = arith.constant dense<0.000000e+00> : vector<64xf32>
    %97 = vector.multi_reduction <add>, %96, %cst_29 [0] : vector<16x64xf32> to vector<64xf32>
    %98 = vector.shape_cast %97 : vector<64xf32> to vector<1x64xf32>
    %99 = math.sqrt %98 : vector<1x64xf32>
    %100 = vector.broadcast %91 : f32 to vector<1x64xf32>
    %101 = arith.addf %100, %99 : vector<1x64xf32>
    %cst_30 = arith.constant 1.000000e+00 : f32
    %102 = vector.broadcast %cst_30 : f32 to vector<1x64xf32>
    %103 = arith.divf %102, %101 : vector<1x64xf32>
    %104 = vector.broadcast %92 : f32 to vector<1x64xf32>
    %105 = arith.mulf %104, %103 : vector<1x64xf32>
    %106 = math.log1p %105 : vector<1x64xf32>
    %cst_31 = arith.constant 1.500000e+01 : f32
    %107 = vector.broadcast %cst_31 : f32 to vector<1x64xf32>
    %108 = arith.mulf %107, %106 : vector<1x64xf32>
    %109 = arith.addf %90, %108 : vector<1x64xf32>
    %110 = arith.mulf %91, %92 : f32
    %111 = vector.broadcast %110 : f32 to vector<1x64xf32>
    %112 = arith.mulf %111, %103 : vector<1x64xf32>
    %113 = arith.mulf %112, %103 : vector<1x64xf32>
    %114 = math.log1p %113 : vector<1x64xf32>
    %115 = arith.addf %109, %114 : vector<1x64xf32>
    %116 = vector.broadcast %105 : vector<1x64xf32> to vector<16x64xf32>
    %117 = arith.mulf %116, %95 : vector<16x64xf32>
    %118 = arith.addf %0, %117 : vector<16x64xf32>
    %c4 = arith.constant 4 : index
    %119 = memref.load %arg1[%c4] : memref<12xf32, #tpu.memory_space<smem>>
    %c4_32 = arith.constant 4 : index
    %120 = memref.load %arg2[%c4_32] : memref<12xf32, #tpu.memory_space<smem>>
    %c0_33 = arith.constant 0 : index
    %c4_34 = arith.constant 4 : index
    %121 = vector.load %arg4[%c0_33, %c4_34] : memref<16x12xf32, #tpu.memory_space<vmem>>, vector<16x1xf32>
    %122 = vector.broadcast %121 : vector<16x1xf32> to vector<16x64xf32>
    %123 = arith.subf %118, %122 : vector<16x64xf32>
    %124 = arith.mulf %123, %123 : vector<16x64xf32>
    %cst_35 = arith.constant dense<0.000000e+00> : vector<64xf32>
    %125 = vector.multi_reduction <add>, %124, %cst_35 [0] : vector<16x64xf32> to vector<64xf32>
    %126 = vector.shape_cast %125 : vector<64xf32> to vector<1x64xf32>
    %127 = math.sqrt %126 : vector<1x64xf32>
    %128 = vector.broadcast %119 : f32 to vector<1x64xf32>
    %129 = arith.addf %128, %127 : vector<1x64xf32>
    %cst_36 = arith.constant 1.000000e+00 : f32
    %130 = vector.broadcast %cst_36 : f32 to vector<1x64xf32>
    %131 = arith.divf %130, %129 : vector<1x64xf32>
    %132 = vector.broadcast %120 : f32 to vector<1x64xf32>
    %133 = arith.mulf %132, %131 : vector<1x64xf32>
    %134 = math.log1p %133 : vector<1x64xf32>
    %cst_37 = arith.constant 1.500000e+01 : f32
    %135 = vector.broadcast %cst_37 : f32 to vector<1x64xf32>
    %136 = arith.mulf %135, %134 : vector<1x64xf32>
    %137 = arith.addf %115, %136 : vector<1x64xf32>
    %138 = arith.mulf %119, %120 : f32
    %139 = vector.broadcast %138 : f32 to vector<1x64xf32>
    %140 = arith.mulf %139, %131 : vector<1x64xf32>
    %141 = arith.mulf %140, %131 : vector<1x64xf32>
    %142 = math.log1p %141 : vector<1x64xf32>
    %143 = arith.addf %137, %142 : vector<1x64xf32>
    %144 = vector.broadcast %133 : vector<1x64xf32> to vector<16x64xf32>
    %145 = arith.mulf %144, %123 : vector<16x64xf32>
    %146 = arith.addf %118, %145 : vector<16x64xf32>
    %c5 = arith.constant 5 : index
    %147 = memref.load %arg1[%c5] : memref<12xf32, #tpu.memory_space<smem>>
    %c5_38 = arith.constant 5 : index
    %148 = memref.load %arg2[%c5_38] : memref<12xf32, #tpu.memory_space<smem>>
    %c0_39 = arith.constant 0 : index
    %c5_40 = arith.constant 5 : index
    %149 = vector.load %arg4[%c0_39, %c5_40] : memref<16x12xf32, #tpu.memory_space<vmem>>, vector<16x1xf32>
    %150 = vector.broadcast %149 : vector<16x1xf32> to vector<16x64xf32>
    %151 = arith.subf %146, %150 : vector<16x64xf32>
    %152 = arith.mulf %151, %151 : vector<16x64xf32>
    %cst_41 = arith.constant dense<0.000000e+00> : vector<64xf32>
    %153 = vector.multi_reduction <add>, %152, %cst_41 [0] : vector<16x64xf32> to vector<64xf32>
    %154 = vector.shape_cast %153 : vector<64xf32> to vector<1x64xf32>
    %155 = math.sqrt %154 : vector<1x64xf32>
    %156 = vector.broadcast %147 : f32 to vector<1x64xf32>
    %157 = arith.addf %156, %155 : vector<1x64xf32>
    %cst_42 = arith.constant 1.000000e+00 : f32
    %158 = vector.broadcast %cst_42 : f32 to vector<1x64xf32>
    %159 = arith.divf %158, %157 : vector<1x64xf32>
    %160 = vector.broadcast %148 : f32 to vector<1x64xf32>
    %161 = arith.mulf %160, %159 : vector<1x64xf32>
    %162 = math.log1p %161 : vector<1x64xf32>
    %cst_43 = arith.constant 1.500000e+01 : f32
    %163 = vector.broadcast %cst_43 : f32 to vector<1x64xf32>
    %164 = arith.mulf %163, %162 : vector<1x64xf32>
    %165 = arith.addf %143, %164 : vector<1x64xf32>
    %166 = arith.mulf %147, %148 : f32
    %167 = vector.broadcast %166 : f32 to vector<1x64xf32>
    %168 = arith.mulf %167, %159 : vector<1x64xf32>
    %169 = arith.mulf %168, %159 : vector<1x64xf32>
    %170 = math.log1p %169 : vector<1x64xf32>
    %171 = arith.addf %165, %170 : vector<1x64xf32>
    %172 = vector.broadcast %161 : vector<1x64xf32> to vector<16x64xf32>
    %173 = arith.mulf %172, %151 : vector<16x64xf32>
    %174 = arith.addf %146, %173 : vector<16x64xf32>
    %c1_44 = arith.constant 1 : index
    %c0_45 = arith.constant 0 : index
    %c0_46 = arith.constant 0 : index
    %175 = vector.load %arg5[%c1_44, %c0_45, %c0_46] : memref<4x16x64xf32, #tpu.memory_space<vmem>>, vector<1x16x64xf32>
    %176 = vector.shape_cast %175 : vector<1x16x64xf32> to vector<16x64xf32>
    %177 = vector.shape_cast %174 : vector<16x64xf32> to vector<1x16x64xf32>
    tpu.vector_store %arg5[%c1_44, %c0_45, %c0_46], %177 {strides = array<i32>} : memref<4x16x64xf32, #tpu.memory_space<vmem>>, vector<1x16x64xf32>,
    %c1_47 = arith.constant 1 : index
    %c0_48 = arith.constant 0 : index
    %178 = vector.load %arg6[%c1_47, %c0_48] : memref<4x64xf32, #tpu.memory_space<vmem>>, vector<1x64xf32>
    tpu.vector_store %arg6[%c1_47, %c0_48], %171 {strides = array<i32>} : memref<4x64xf32, #tpu.memory_space<vmem>>, vector<1x64xf32>,
    %cst_49 = arith.constant 0.000000e+00 : f32
    %179 = vector.broadcast %cst_49 : f32 to vector<1x64xf32>
    %c6 = arith.constant 6 : index
    %180 = memref.load %arg1[%c6] : memref<12xf32, #tpu.memory_space<smem>>
    %c6_50 = arith.constant 6 : index
    %181 = memref.load %arg2[%c6_50] : memref<12xf32, #tpu.memory_space<smem>>
    %c0_51 = arith.constant 0 : index
    %c6_52 = arith.constant 6 : index
    %182 = vector.load %arg4[%c0_51, %c6_52] : memref<16x12xf32, #tpu.memory_space<vmem>>, vector<16x1xf32>
    %183 = vector.broadcast %182 : vector<16x1xf32> to vector<16x64xf32>
    %184 = arith.subf %0, %183 : vector<16x64xf32>
    %185 = arith.mulf %184, %184 : vector<16x64xf32>
    %cst_53 = arith.constant dense<0.000000e+00> : vector<64xf32>
    %186 = vector.multi_reduction <add>, %185, %cst_53 [0] : vector<16x64xf32> to vector<64xf32>
    %187 = vector.shape_cast %186 : vector<64xf32> to vector<1x64xf32>
    %188 = math.sqrt %187 : vector<1x64xf32>
    %189 = vector.broadcast %180 : f32 to vector<1x64xf32>
    %190 = arith.addf %189, %188 : vector<1x64xf32>
    %cst_54 = arith.constant 1.000000e+00 : f32
    %191 = vector.broadcast %cst_54 : f32 to vector<1x64xf32>
    %192 = arith.divf %191, %190 : vector<1x64xf32>
    %193 = vector.broadcast %181 : f32 to vector<1x64xf32>
    %194 = arith.mulf %193, %192 : vector<1x64xf32>
    %195 = math.log1p %194 : vector<1x64xf32>
    %cst_55 = arith.constant 1.500000e+01 : f32
    %196 = vector.broadcast %cst_55 : f32 to vector<1x64xf32>
    %197 = arith.mulf %196, %195 : vector<1x64xf32>
    %198 = arith.addf %179, %197 : vector<1x64xf32>
    %199 = arith.mulf %180, %181 : f32
    %200 = vector.broadcast %199 : f32 to vector<1x64xf32>
    %201 = arith.mulf %200, %192 : vector<1x64xf32>
    %202 = arith.mulf %201, %192 : vector<1x64xf32>
    %203 = math.log1p %202 : vector<1x64xf32>
    %204 = arith.addf %198, %203 : vector<1x64xf32>
    %205 = vector.broadcast %194 : vector<1x64xf32> to vector<16x64xf32>
    %206 = arith.mulf %205, %184 : vector<16x64xf32>
    %207 = arith.addf %0, %206 : vector<16x64xf32>
    %c7 = arith.constant 7 : index
    %208 = memref.load %arg1[%c7] : memref<12xf32, #tpu.memory_space<smem>>
    %c7_56 = arith.constant 7 : index
    %209 = memref.load %arg2[%c7_56] : memref<12xf32, #tpu.memory_space<smem>>
    %c0_57 = arith.constant 0 : index
    %c7_58 = arith.constant 7 : index
    %210 = vector.load %arg4[%c0_57, %c7_58] : memref<16x12xf32, #tpu.memory_space<vmem>>, vector<16x1xf32>
    %211 = vector.broadcast %210 : vector<16x1xf32> to vector<16x64xf32>
    %212 = arith.subf %207, %211 : vector<16x64xf32>
    %213 = arith.mulf %212, %212 : vector<16x64xf32>
    %cst_59 = arith.constant dense<0.000000e+00> : vector<64xf32>
    %214 = vector.multi_reduction <add>, %213, %cst_59 [0] : vector<16x64xf32> to vector<64xf32>
    %215 = vector.shape_cast %214 : vector<64xf32> to vector<1x64xf32>
    %216 = math.sqrt %215 : vector<1x64xf32>
    %217 = vector.broadcast %208 : f32 to vector<1x64xf32>
    %218 = arith.addf %217, %216 : vector<1x64xf32>
    %cst_60 = arith.constant 1.000000e+00 : f32
    %219 = vector.broadcast %cst_60 : f32 to vector<1x64xf32>
    %220 = arith.divf %219, %218 : vector<1x64xf32>
    %221 = vector.broadcast %209 : f32 to vector<1x64xf32>
    %222 = arith.mulf %221, %220 : vector<1x64xf32>
    %223 = math.log1p %222 : vector<1x64xf32>
    %cst_61 = arith.constant 1.500000e+01 : f32
    %224 = vector.broadcast %cst_61 : f32 to vector<1x64xf32>
    %225 = arith.mulf %224, %223 : vector<1x64xf32>
    %226 = arith.addf %204, %225 : vector<1x64xf32>
    %227 = arith.mulf %208, %209 : f32
    %228 = vector.broadcast %227 : f32 to vector<1x64xf32>
    %229 = arith.mulf %228, %220 : vector<1x64xf32>
    %230 = arith.mulf %229, %220 : vector<1x64xf32>
    %231 = math.log1p %230 : vector<1x64xf32>
    %232 = arith.addf %226, %231 : vector<1x64xf32>
    %233 = vector.broadcast %222 : vector<1x64xf32> to vector<16x64xf32>
    %234 = arith.mulf %233, %212 : vector<16x64xf32>
    %235 = arith.addf %207, %234 : vector<16x64xf32>
    %c8 = arith.constant 8 : index
    %236 = memref.load %arg1[%c8] : memref<12xf32, #tpu.memory_space<smem>>
    %c8_62 = arith.constant 8 : index
    %237 = memref.load %arg2[%c8_62] : memref<12xf32, #tpu.memory_space<smem>>
    %c0_63 = arith.constant 0 : index
    %c8_64 = arith.constant 8 : index
    %238 = vector.load %arg4[%c0_63, %c8_64] : memref<16x12xf32, #tpu.memory_space<vmem>>, vector<16x1xf32>
    %239 = vector.broadcast %238 : vector<16x1xf32> to vector<16x64xf32>
    %240 = arith.subf %235, %239 : vector<16x64xf32>
    %241 = arith.mulf %240, %240 : vector<16x64xf32>
    %cst_65 = arith.constant dense<0.000000e+00> : vector<64xf32>
    %242 = vector.multi_reduction <add>, %241, %cst_65 [0] : vector<16x64xf32> to vector<64xf32>
    %243 = vector.shape_cast %242 : vector<64xf32> to vector<1x64xf32>
    %244 = math.sqrt %243 : vector<1x64xf32>
    %245 = vector.broadcast %236 : f32 to vector<1x64xf32>
    %246 = arith.addf %245, %244 : vector<1x64xf32>
    %cst_66 = arith.constant 1.000000e+00 : f32
    %247 = vector.broadcast %cst_66 : f32 to vector<1x64xf32>
    %248 = arith.divf %247, %246 : vector<1x64xf32>
    %249 = vector.broadcast %237 : f32 to vector<1x64xf32>
    %250 = arith.mulf %249, %248 : vector<1x64xf32>
    %251 = math.log1p %250 : vector<1x64xf32>
    %cst_67 = arith.constant 1.500000e+01 : f32
    %252 = vector.broadcast %cst_67 : f32 to vector<1x64xf32>
    %253 = arith.mulf %252, %251 : vector<1x64xf32>
    %254 = arith.addf %232, %253 : vector<1x64xf32>
    %255 = arith.mulf %236, %237 : f32
    %256 = vector.broadcast %255 : f32 to vector<1x64xf32>
    %257 = arith.mulf %256, %248 : vector<1x64xf32>
    %258 = arith.mulf %257, %248 : vector<1x64xf32>
    %259 = math.log1p %258 : vector<1x64xf32>
    %260 = arith.addf %254, %259 : vector<1x64xf32>
    %261 = vector.broadcast %250 : vector<1x64xf32> to vector<16x64xf32>
    %262 = arith.mulf %261, %240 : vector<16x64xf32>
    %263 = arith.addf %235, %262 : vector<16x64xf32>
    %c2_68 = arith.constant 2 : index
    %c0_69 = arith.constant 0 : index
    %c0_70 = arith.constant 0 : index
    %264 = vector.load %arg5[%c2_68, %c0_69, %c0_70] : memref<4x16x64xf32, #tpu.memory_space<vmem>>, vector<1x16x64xf32>
    %265 = vector.shape_cast %264 : vector<1x16x64xf32> to vector<16x64xf32>
    %266 = vector.shape_cast %263 : vector<16x64xf32> to vector<1x16x64xf32>
    tpu.vector_store %arg5[%c2_68, %c0_69, %c0_70], %266 {strides = array<i32>} : memref<4x16x64xf32, #tpu.memory_space<vmem>>, vector<1x16x64xf32>,
    %c2_71 = arith.constant 2 : index
    %c0_72 = arith.constant 0 : index
    %267 = vector.load %arg6[%c2_71, %c0_72] : memref<4x64xf32, #tpu.memory_space<vmem>>, vector<1x64xf32>
    tpu.vector_store %arg6[%c2_71, %c0_72], %260 {strides = array<i32>} : memref<4x64xf32, #tpu.memory_space<vmem>>, vector<1x64xf32>,
    %cst_73 = arith.constant 0.000000e+00 : f32
    %268 = vector.broadcast %cst_73 : f32 to vector<1x64xf32>
    %c9 = arith.constant 9 : index
    %269 = memref.load %arg1[%c9] : memref<12xf32, #tpu.memory_space<smem>>
    %c9_74 = arith.constant 9 : index
    %270 = memref.load %arg2[%c9_74] : memref<12xf32, #tpu.memory_space<smem>>
    %c0_75 = arith.constant 0 : index
    %c9_76 = arith.constant 9 : index
    %271 = vector.load %arg4[%c0_75, %c9_76] : memref<16x12xf32, #tpu.memory_space<vmem>>, vector<16x1xf32>
    %272 = vector.broadcast %271 : vector<16x1xf32> to vector<16x64xf32>
    %273 = arith.subf %0, %272 : vector<16x64xf32>
    %274 = arith.mulf %273, %273 : vector<16x64xf32>
    %cst_77 = arith.constant dense<0.000000e+00> : vector<64xf32>
    %275 = vector.multi_reduction <add>, %274, %cst_77 [0] : vector<16x64xf32> to vector<64xf32>
    %276 = vector.shape_cast %275 : vector<64xf32> to vector<1x64xf32>
    %277 = math.sqrt %276 : vector<1x64xf32>
    %278 = vector.broadcast %269 : f32 to vector<1x64xf32>
    %279 = arith.addf %278, %277 : vector<1x64xf32>
    %cst_78 = arith.constant 1.000000e+00 : f32
    %280 = vector.broadcast %cst_78 : f32 to vector<1x64xf32>
    %281 = arith.divf %280, %279 : vector<1x64xf32>
    %282 = vector.broadcast %270 : f32 to vector<1x64xf32>
    %283 = arith.mulf %282, %281 : vector<1x64xf32>
    %284 = math.log1p %283 : vector<1x64xf32>
    %cst_79 = arith.constant 1.500000e+01 : f32
    %285 = vector.broadcast %cst_79 : f32 to vector<1x64xf32>
    %286 = arith.mulf %285, %284 : vector<1x64xf32>
    %287 = arith.addf %268, %286 : vector<1x64xf32>
    %288 = arith.mulf %269, %270 : f32
    %289 = vector.broadcast %288 : f32 to vector<1x64xf32>
    %290 = arith.mulf %289, %281 : vector<1x64xf32>
    %291 = arith.mulf %290, %281 : vector<1x64xf32>
    %292 = math.log1p %291 : vector<1x64xf32>
    %293 = arith.addf %287, %292 : vector<1x64xf32>
    %294 = vector.broadcast %283 : vector<1x64xf32> to vector<16x64xf32>
    %295 = arith.mulf %294, %273 : vector<16x64xf32>
    %296 = arith.addf %0, %295 : vector<16x64xf32>
    %c10 = arith.constant 10 : index
    %297 = memref.load %arg1[%c10] : memref<12xf32, #tpu.memory_space<smem>>
    %c10_80 = arith.constant 10 : index
    %298 = memref.load %arg2[%c10_80] : memref<12xf32, #tpu.memory_space<smem>>
    %c0_81 = arith.constant 0 : index
    %c10_82 = arith.constant 10 : index
    %299 = vector.load %arg4[%c0_81, %c10_82] : memref<16x12xf32, #tpu.memory_space<vmem>>, vector<16x1xf32>
    %300 = vector.broadcast %299 : vector<16x1xf32> to vector<16x64xf32>
    %301 = arith.subf %296, %300 : vector<16x64xf32>
    %302 = arith.mulf %301, %301 : vector<16x64xf32>
    %cst_83 = arith.constant dense<0.000000e+00> : vector<64xf32>
    %303 = vector.multi_reduction <add>, %302, %cst_83 [0] : vector<16x64xf32> to vector<64xf32>
    %304 = vector.shape_cast %303 : vector<64xf32> to vector<1x64xf32>
    %305 = math.sqrt %304 : vector<1x64xf32>
    %306 = vector.broadcast %297 : f32 to vector<1x64xf32>
    %307 = arith.addf %306, %305 : vector<1x64xf32>
    %cst_84 = arith.constant 1.000000e+00 : f32
    %308 = vector.broadcast %cst_84 : f32 to vector<1x64xf32>
    %309 = arith.divf %308, %307 : vector<1x64xf32>
    %310 = vector.broadcast %298 : f32 to vector<1x64xf32>
    %311 = arith.mulf %310, %309 : vector<1x64xf32>
    %312 = math.log1p %311 : vector<1x64xf32>
    %cst_85 = arith.constant 1.500000e+01 : f32
    %313 = vector.broadcast %cst_85 : f32 to vector<1x64xf32>
    %314 = arith.mulf %313, %312 : vector<1x64xf32>
    %315 = arith.addf %293, %314 : vector<1x64xf32>
    %316 = arith.mulf %297, %298 : f32
    %317 = vector.broadcast %316 : f32 to vector<1x64xf32>
    %318 = arith.mulf %317, %309 : vector<1x64xf32>
    %319 = arith.mulf %318, %309 : vector<1x64xf32>
    %320 = math.log1p %319 : vector<1x64xf32>
    %321 = arith.addf %315, %320 : vector<1x64xf32>
    %322 = vector.broadcast %311 : vector<1x64xf32> to vector<16x64xf32>
    %323 = arith.mulf %322, %301 : vector<16x64xf32>
    %324 = arith.addf %296, %323 : vector<16x64xf32>
    %c11 = arith.constant 11 : index
    %325 = memref.load %arg1[%c11] : memref<12xf32, #tpu.memory_space<smem>>
    %c11_86 = arith.constant 11 : index
    %326 = memref.load %arg2[%c11_86] : memref<12xf32, #tpu.memory_space<smem>>
    %c0_87 = arith.constant 0 : index
    %c11_88 = arith.constant 11 : index
    %327 = vector.load %arg4[%c0_87, %c11_88] : memref<16x12xf32, #tpu.memory_space<vmem>>, vector<16x1xf32>
    %328 = vector.broadcast %327 : vector<16x1xf32> to vector<16x64xf32>
    %329 = arith.subf %324, %328 : vector<16x64xf32>
    %330 = arith.mulf %329, %329 : vector<16x64xf32>
    %cst_89 = arith.constant dense<0.000000e+00> : vector<64xf32>
    %331 = vector.multi_reduction <add>, %330, %cst_89 [0] : vector<16x64xf32> to vector<64xf32>
    %332 = vector.shape_cast %331 : vector<64xf32> to vector<1x64xf32>
    %333 = math.sqrt %332 : vector<1x64xf32>
    %334 = vector.broadcast %325 : f32 to vector<1x64xf32>
    %335 = arith.addf %334, %333 : vector<1x64xf32>
    %cst_90 = arith.constant 1.000000e+00 : f32
    %336 = vector.broadcast %cst_90 : f32 to vector<1x64xf32>
    %337 = arith.divf %336, %335 : vector<1x64xf32>
    %338 = vector.broadcast %326 : f32 to vector<1x64xf32>
    %339 = arith.mulf %338, %337 : vector<1x64xf32>
    %340 = math.log1p %339 : vector<1x64xf32>
    %cst_91 = arith.constant 1.500000e+01 : f32
    %341 = vector.broadcast %cst_91 : f32 to vector<1x64xf32>
    %342 = arith.mulf %341, %340 : vector<1x64xf32>
    %343 = arith.addf %321, %342 : vector<1x64xf32>
    %344 = arith.mulf %325, %326 : f32
    %345 = vector.broadcast %344 : f32 to vector<1x64xf32>
    %346 = arith.mulf %345, %337 : vector<1x64xf32>
    %347 = arith.mulf %346, %337 : vector<1x64xf32>
    %348 = math.log1p %347 : vector<1x64xf32>
    %349 = arith.addf %343, %348 : vector<1x64xf32>
    %350 = vector.broadcast %339 : vector<1x64xf32> to vector<16x64xf32>
    %351 = arith.mulf %350, %329 : vector<16x64xf32>
    %352 = arith.addf %324, %351 : vector<16x64xf32>
    %c3_92 = arith.constant 3 : index
    %c0_93 = arith.constant 0 : index
    %c0_94 = arith.constant 0 : index
    %353 = vector.load %arg5[%c3_92, %c0_93, %c0_94] : memref<4x16x64xf32, #tpu.memory_space<vmem>>, vector<1x16x64xf32>
    %354 = vector.shape_cast %353 : vector<1x16x64xf32> to vector<16x64xf32>
    %355 = vector.shape_cast %352 : vector<16x64xf32> to vector<1x16x64xf32>
    tpu.vector_store %arg5[%c3_92, %c0_93, %c0_94], %355 {strides = array<i32>} : memref<4x16x64xf32, #tpu.memory_space<vmem>>, vector<1x16x64xf32>,
    %c3_95 = arith.constant 3 : index
    %c0_96 = arith.constant 0 : index
    %356 = vector.load %arg6[%c3_95, %c0_96] : memref<4x64xf32, #tpu.memory_space<vmem>>, vector<1x64xf32>
    tpu.vector_store %arg6[%c3_95, %c0_96], %349 {strides = array<i32>} : memref<4x64xf32, #tpu.memory_space<vmem>>, vector<1x64xf32>,
    return
  }
  func.func @transform_0(%arg0: i32) -> i32 {
    %c0_i32 = arith.constant 0 : i32
    %c0_i32_0 = arith.constant 0 : i32
    return %c0_i32 : i32
  }
  func.func @transform_1(%arg0: i32) -> i32 {
    %c0_i32 = arith.constant 0 : i32
    %c0_i32_0 = arith.constant 0 : i32
    return %c0_i32 : i32
  }
  func.func @transform_2(%arg0: i32) -> (i32, i32) {
    %c0_i32 = arith.constant 0 : i32
    %c0_i32_0 = arith.constant 0 : i32
    return %c0_i32, %arg0 : i32, i32
  }
  func.func @transform_3(%arg0: i32) -> (i32, i32) {
    %c0_i32 = arith.constant 0 : i32
    %c0_i32_0 = arith.constant 0 : i32
    %c0_i32_1 = arith.constant 0 : i32
    return %c0_i32, %c0_i32_0 : i32, i32
  }
  func.func @transform_4(%arg0: i32) -> (i32, i32, i32) {
    %c0_i32 = arith.constant 0 : i32
    %c0_i32_0 = arith.constant 0 : i32
    %c0_i32_1 = arith.constant 0 : i32
    return %c0_i32, %c0_i32_0, %arg0 : i32, i32, i32
  }
  func.func @transform_5(%arg0: i32) -> (i32, i32) {
    %c0_i32 = arith.constant 0 : i32
    %c0_i32_0 = arith.constant 0 : i32
    return %c0_i32, %arg0 : i32, i32
  }
}

</mosaic_0001>

<bundles_post_ra>
// kernel: tpu_custom_call.1
= control target key start
LH: loop header
LB: loop body
LE: loop exit
PB: predicated region body
PF: predicated region fallthrough
CT: control target
= control target key end

     0   :  { %11 = vsyncpa [#allocation5], 0  ;;  %s1948_s0 = inlined_call_operand.hbm [shape: f32[12], index: 0, kind: input, shape index: {}]   ;;  %s1949_s1 = inlined_call_operand.vmem [shape: f32[12], index: 1, kind: input, shape index: {}]   ;;  %s1950_s2 = inlined_call_operand.hbm [shape: f32[16,64], index: 2, kind: input, shape index: {}]   ;;  %s1951_s3 = inlined_call_operand.hbm [shape: f32[16,12], index: 3, kind: input, shape index: {}]   ;;  %s1952_s4 = inlined_call_operand.hbm [shape: f32[4,16,64], index: 4, kind: output, shape index: {0}]   ;;  %s1953_s5 = inlined_call_operand.hbm [shape: f32[4,64], index: 5, kind: output, shape index: {1}]  }
   0x1   :  { %12 = vsyncpa [#allocation6], 0 }
   0x2   :  { %13 = vsyncpa [#allocation3], 0 }
   0x3   :  { %14 = vsyncpa [#allocation10], 0 }
   0x4   :  { %15 = vsyncpa [#allocation4], 0 }
   0x5   :  { %16 = vsyncpa [#allocation13], 0  ;;  %s31_s20 = sshll.u32 %s1949_s1, 4  ;;  %s1190_s21 = smov [#allocation2]   ;;  %s32_s20 = int_to_ptr.vmem [resolvable:$true] %s31_s20 }
   0x6   :  { %24 = dma.hbm_to_smem %s1948_s0, 16, %s1190_s21, [#allocation5]  }
   0x7   :  { %s1086_s24 = scalar_lea.vmem %s32_s20, 16  ;;  %p1091_p1 = scmp.lt.s32.totalorder %s32_s20, %s32_s20 }
   0x8   :  { %p1087_p0 = scmp.ne.s32.totalorder %s32_s20, %s1086_s24  ;;  %p1092_p2 = scmp.lt.s32.totalorder %s1086_s24, %s1086_s24 }
   0xa   :  { %p1093_p3 = por %p1092_p2, %p1091_p1 }
   0xc   :  { %p1094_p4 = pnand %p1093_p3, %p1087_p0 }
   0xe   :  { %1097 = shalt.err (!%p1094_p4)
}
   0xf   :  { %s1191_s25 = smov [#allocation7]   ;;  %s1192_s26 = smov [#allocation8]  }
  0x10   :  { %34 = dma.vmem_to_smem %s32_s20, 16, %s1191_s25, [#allocation6]  }
  0x11   :  { %s40_s27 = sshll.u32 %s1192_s26, 4  ;;  %s41_s27 = int_to_ptr.vmem [resolvable:$true] %s40_s27 }
  0x12   :  { %s1106_s28 = scalar_lea.vmem %s41_s27, 256  ;;  %p1111_p6 = scmp.lt.s32.totalorder %s41_s27, %s41_s27 }
  0x13   :  { %p1107_p5 = scmp.ne.s32.totalorder %s41_s27, %s1106_s28  ;;  %p1112_p7 = scmp.lt.s32.totalorder %s1106_s28, %s1106_s28 }
  0x15   :  { %p1113_p8 = por %p1112_p7, %p1111_p6 }
  0x17   :  { %p1114_p9 = pnand %p1113_p8, %p1107_p5 }
  0x19   :  { %1117 = shalt.err (!%p1114_p9)
}
  0x1a   :  { %s1193_s0 = smov 128   ;;  %s1194_s1 = smov 8  }
  0x1b   :  { %46 = dma.hbm_to_vmem [thread:$0]  %s1950_s2, 256, %s41_s27, [#allocation3], %s1193_s0, %s1193_s0, %s1194_s1  }
  0x1c   :  { %s1195_s6 = smov [#allocation9]  }
  0x1d   :  { %s52_s7 = sshll.u32 %s1195_s6, 4  ;;  %s53_s7 = int_to_ptr.vmem [resolvable:$true] %s52_s7 }
  0x1e   :  { %s1126_s8 = scalar_lea.vmem %s53_s7, 256  ;;  %p1131_p11 = scmp.lt.s32.totalorder %s53_s7, %s53_s7 }
  0x1f   :  { %p1127_p10 = scmp.ne.s32.totalorder %s53_s7, %s1126_s8  ;;  %p1132_p12 = scmp.lt.s32.totalorder %s1126_s8, %s1126_s8 }
  0x21   :  { %p1133_p13 = por %p1132_p12, %p1131_p11 }
  0x23   :  { %p1134_p0 = pnand %p1133_p13, %p1127_p10 }
  0x25   :  { %1137 = shalt.err (!%p1134_p0)
}
  0x26   :  { %58 = dma.hbm_to_vmem [thread:$0]  %s1951_s3, 256, %s53_s7, [#allocation10], %s1193_s0, %s1193_s0, %s1194_s1  }
  0x27   :  { %1178 = dma.done.wait [#allocation5], 16  }
  0x28   :  { %1179 = vsyncadd [#allocation5], 4294967280 }
  0x29   :  { %1180 = dma.done.wait [#allocation6], 16  }
  0x2a   :  { %1181 = vsyncadd [#allocation6], 4294967280 }
  0x2b   :  { %1182 = dma.done.wait [#allocation3], 256  }
  0x2c   :  { %1183 = vsyncadd [#allocation3], 4294967040 }
  0x2d   :  { %1184 = dma.done.wait [#allocation10], 256  }
  0x2e   :  { %1185 = vsyncadd [#allocation10], 4294967040 }
  0x2f   :  { %71 = sfence }
  0x30   :  { %v280_v0 = vld [vmem:[#allocation9] sm:$0xff]  ;;  %v1196_v1 = vmov 3   ;;  %v1197_v2 = vmov 0   ;;  %v281_v3 = vld [vmem:[#allocation9 + $0x8] sm:$0xff]  ;;  %v1198_v4 = vmov 6   ;;  %v1199_v5 = vmov 9  }
  0x31   :  { %964 = vset.pattern.permute.xlu1 %v1196_v1  ;;  %963 = vset.pattern.permute.xlu0 %v1197_v2  ;;  %v1200_v6 = vmov 1   ;;  %v1201_v7 = vmov 4   ;;  %v1202_v8 = vmov 7   ;;  %v1203_v9 = vmov 2   ;;  %s1258_s2 = sld [smem:[#allocation7]]  ;;  %v1282_v14 = vld [vmem:[#allocation8] sm:$0xff] }
  0x32   :  { %284 = vperm.xlu1 %964, %v280_v0   ;;  %80 = vperm.xlu0 %963, %v280_v0   ;;  %v1204_v10 = vmov 5   ;;  %v1205_v11 = vmov 10   ;;  %v1206_v12 = vmov 11   ;;  %s1260_s3 = sld [smem:[#allocation2]]  ;;  %v1207_v13 = vmov 8   ;;  %v1290_v19 = vld [vmem:[#allocation8 + $0x8] sm:$0xff] }
  0x33   :  { %s1262_s11 = sld [smem:[#allocation7 + $0x3]]  ;;  %vm92_vm0 = vcmask 523264  }
  0x34   :  { %s1266_s13 = sld [smem:[#allocation2 + $0x3]] }
  0x35   :  { %s1270_s15 = sld [smem:[#allocation7 + $0x6]] }
  0x36   :  { %289 = vperm.xlu1 %964, %v281_v3   ;;  %85 = vperm.xlu0 %963, %v281_v3   ;;  %s1272_s16 = sld [smem:[#allocation2 + $0x6]] }
  0x37   :  { %s1274_s17 = sld [smem:[#allocation7 + $0x9]] }
  0x38   :  { %s126_s12 = smul.f32 %s1258_s2, %s1260_s3  ;;  %s1278_s19 = sld [smem:[#allocation2 + $0x9]] }
  0x39   :  { %s1292_s21 = sld [smem:[#allocation7 + $0x4]] }
  0x3a   :  { %966 = vset.pattern.permute.xlu1 %v1198_v4  ;;  %965 = vset.pattern.permute.xlu0 %v1198_v4  ;;  %s329_s14 = smul.f32 %s1262_s11, %s1266_s13  ;;  %s1294_s22 = sld [smem:[#allocation2 + $0x4]] }
  0x3b   :  { %492 = vperm.xlu1 %966, %v281_v3   ;;  %487 = vperm.xlu0 %965, %v280_v0   ;;  %s1487_s24 = sld [smem:[#allocation2 + $0x1]] }
  0x3c   :  { %s532_s18 = smul.f32 %s1270_s15, %s1272_s16  ;;  %s1532_s25 = sld [smem:[#allocation2 + $0x7]] }
  0x3d   :  { %s1557_s26 = sld [smem:[#allocation7 + $0x1]] }
  0x3e   :  { %s735_s20 = smul.f32 %s1274_s17, %s1278_s19  ;;  %s1560_s27 = sld [smem:[#allocation2 + $0xa]] }
  0x3f   :  { %967 = vset.pattern.permute.xlu1 %v1199_v5  ;;  %968 = vset.pattern.permute.xlu0 %v1199_v5  ;;  %s1597_s29 = sld [smem:[#allocation7 + $0x7]] }
  0x40   :  { %690 = vperm.xlu1 %967, %v280_v0   ;;  %695 = vperm.xlu0 %968, %v281_v3   ;;  %s394_s23 = smul.f32 %s1292_s21, %s1294_s22  ;;  %s1629_s30 = sld [smem:[#allocation7 + $0xa]] }
  0x41   :  { %s1744_s7 = sld [smem:[#allocation2 + $0x2]] }
  0x42   :  { %s1747_s8 = sld [smem:[#allocation2 + $0x5]] }
  0x43   :  { %s191_s28 = smul.f32 %s1557_s26, %s1487_s24  ;;  %s1783_s10 = sld [smem:[#allocation2 + $0x8]] }
  0x44   :  { %969 = vset.pattern.permute.xlu1 %v1200_v6  ;;  %970 = vset.pattern.permute.xlu0 %v1201_v7 }
  0x45   :  { %147 = vperm.xlu1 %969, %v280_v0   ;;  %350 = vperm.xlu0 %970, %v280_v0   ;;  %s597_s6 = smul.f32 %s1597_s29, %s1532_s25 }
  0x46   :  { %s800_s9 = smul.f32 %s1629_s30, %s1560_s27 }
  0x49   :  { %151 = vperm.xlu1 %969, %v281_v3   ;;  %973 = vset.pattern.permute.xlu0 %v1202_v8 }
  0x4a   :  { %557 = vperm.xlu0 %973, %v281_v3  }
  0x4d   :  { %971 = vset.pattern.permute.xlu1 %v1201_v7 }
  0x4e   :  { %354 = vperm.xlu1 %971, %v281_v3   ;;  %975 = vset.pattern.permute.xlu0 %v1203_v9 }
  0x4f   :  { %212 = vperm.xlu0 %975, %v280_v0  }
  0x52   :  { %972 = vset.pattern.permute.xlu1 %v1202_v8 }
  0x53   :  { %553 = vperm.xlu1 %972, %v280_v0   ;;  %978 = vset.pattern.permute.xlu0 %v1204_v10 }
  0x54   :  { %419 = vperm.xlu0 %978, %v281_v3  }
  0x57   :  { %974 = vset.pattern.permute.xlu1 %v1205_v11 }
  0x58   :  { %756 = vperm.xlu1 %974, %v280_v0   ;;  %980 = vset.pattern.permute.xlu0 %v1206_v12 }
  0x59   :  { %821 = vperm.xlu0 %980, %v280_v0  }
  0x5c   :  { %760 = vperm.xlu1 %974, %v281_v3  }
  0x60   :  { %976 = vset.pattern.permute.xlu1 %v1203_v9 }
  0x61   :  { %216 = vperm.xlu1 %976, %v281_v3  }
  0x65   :  { %977 = vset.pattern.permute.xlu1 %v1204_v10 }
  0x66   :  { %415 = vperm.xlu1 %977, %v280_v0  }
  0x6a   :  { %979 = vset.pattern.permute.xlu1 %v1207_v13 }
  0x6b   :  { %618 = vperm.xlu1 %979, %v280_v0  }
  0x6f   :  { %622 = vperm.xlu1 %979, %v281_v3  }
  0x73   :  { %981 = vset.pattern.permute.xlu1 %v1206_v12 }
  0x74   :  { %825 = vperm.xlu1 %981, %v281_v3  }
  0xad   :  { %v285_v15 = vpop.permute.xlu1 %284  ;;  %v81_v16 = vpop.permute.xlu0 %80 }
  0xae   :  { %v1285_v17 = vsub.f32 %v1282_v14, %v285_v15  ;;  %v1288_v18 = vsub.f32 %v1282_v14, %v81_v16  ;;  %v312_v16 = vstv %s1266_s13  ;;  %s1820_s13 = sld [smem:[#allocation7 + $0x8]] }
  0xb0   :  { %v294_v22 = vmul.f32 %v1285_v17, %v1285_v17  ;;  %v90_v23 = vmul.f32 %v1288_v18, %v1288_v18 }
  0xb1   :  { %v290_v20 = vpop.permute.xlu1 %289  ;;  %v86_v21 = vpop.permute.xlu0 %85 }
  0xb2   :  { %v1301_v24 = vsub.f32 %v1290_v19, %v290_v20  ;;  %v1304_v25 = vsub.f32 %v1290_v19, %v86_v21  ;;  %v296_v28 = vsel %vm92_vm0, %v294_v22, 0.0  ;;  %v93_v29 = vsel %vm92_vm0, %v90_v23, 0.0 }
  0xb3   :  { %v109_v22 = vstv %s1260_s3  ;;  %s1801_s3 = sld [smem:[#allocation7 + $0x5]] }
  0xb4   :  { %v295_v26 = vmul.f32 %v1301_v24, %v1301_v24  ;;  %v91_v27 = vmul.f32 %v1304_v25, %v1304_v25 }
  0xb6   :  { %v297_v30 = vsel %vm92_vm0, %v295_v26, 0.0  ;;  %v94_v31 = vsel %vm92_vm0, %v91_v27, 0.0  ;;  %v493_v32 = vpop.permute.xlu1 %492  ;;  %v488_v33 = vpop.permute.xlu0 %487 }
  0xb7   :  { %v298_v34 = vadd.f32 %v297_v30, %v296_v28  ;;  %v95_v35 = vadd.f32 %v94_v31, %v93_v29  ;;  %v1315_v36 = vsub.f32 %v1290_v19, %v493_v32  ;;  %v1318_v37 = vsub.f32 %v1282_v14, %v488_v33 }
  0xb9   :  { %v299_v38 = vrot.slane %v298_v34, 4  ;;  %v96_v39 = vrot.slane %v95_v35, 4  ;;  %v498_v40 = vmul.f32 %v1315_v36, %v1315_v36  ;;  %v497_v41 = vmul.f32 %v1318_v37, %v1318_v37 }
  0xbb   :  { %v300_v42 = vadd.f32 %v299_v38, %v298_v34  ;;  %v97_v43 = vadd.f32 %v96_v39, %v95_v35  ;;  %v500_v44 = vsel %vm92_vm0, %v498_v40, 0.0  ;;  %v499_v45 = vsel %vm92_vm0, %v497_v41, 0.0  ;;  %v691_v46 = vpop.permute.xlu1 %690  ;;  %v696_v47 = vpop.permute.xlu0 %695 }
  0xbc   :  { %v501_v48 = vadd.f32 %v500_v44, %v499_v45  ;;  %v1329_v49 = vsub.f32 %v1282_v14, %v691_v46  ;;  %v1332_v50 = vsub.f32 %v1290_v19, %v696_v47  ;;  %v515_v34 = vstv %s1272_s16  ;;  %s662_s16 = smul.f32 %s1820_s13, %s1783_s10 }
  0xbd   :  { %v301_v51 = vrot.slane %v300_v42, 2  ;;  %v98_v52 = vrot.slane %v97_v43, 2  ;;  %v718_v44 = vstv %s1278_s19 }
  0xbe   :  { %v502_v53 = vrot.slane %v501_v48, 4  ;;  %v700_v54 = vmul.f32 %v1329_v49, %v1329_v49  ;;  %v701_v55 = vmul.f32 %v1332_v50, %v1332_v50 }
  0xbf   :  { %v302_v56 = vadd.f32 %v301_v51, %v300_v42  ;;  %v99_v57 = vadd.f32 %v98_v52, %v97_v43  ;;  %v316_v51 = vstv %s1262_s11  ;;  %s1808_s11 = sld [smem:[#allocation2 + $0xb]] }
  0xc0   :  { %v503_v58 = vadd.f32 %v502_v53, %v501_v48  ;;  %v702_v59 = vsel %vm92_vm0, %v700_v54, 0.0  ;;  %v703_v60 = vsel %vm92_vm0, %v701_v55, 0.0  ;;  %v148_v41 = vpop.permute.xlu1 %147  ;;  %v330_v53 = vstv %s329_s14  ;;  %s459_s14 = smul.f32 %s1801_s3, %s1747_s8 }
  0xc1   :  { %v303_v61 = vrot.slane %v302_v56, 1  ;;  %v100_v62 = vrot.slane %v99_v57, 1  ;;  %v704_v63 = vadd.f32 %v703_v60, %v702_v59  ;;  %v113_v54 = vstv %s1258_s2  ;;  %s1798_s2 = sld [smem:[#allocation7 + $0x2]] }
  0xc2   :  { %v504_v0 = vrot.slane %v503_v58, 2  ;;  %v127_v55 = vstv %s126_s12 }
  0xc3   :  { %v304_v1 = vadd.f32 %v303_v61, %v302_v56  ;;  %v101_v2 = vadd.f32 %v100_v62, %v99_v57  ;;  %v705_v3 = vrot.slane %v704_v63, 4 }
  0xc4   :  { %v505_v4 = vadd.f32 %v504_v0, %v503_v58  ;;  %v152_v48 = vpop.permute.xlu1 %151 }
  0xc5   :  { %982 = vrsqrt.f32 %v304_v1  ;;  %v706_v6 = vadd.f32 %v705_v3, %v704_v63  ;;  %vm307_vm1 = vcmp.eq.f32.partialorder %v304_v1, inf  ;;  %v310_v20 = vand.u32 2147483648, %v304_v1 }
  0xc6   :  { %984 = vrsqrt.f32 %v101_v2  ;;  %v506_v5 = vrot.slane %v505_v4, 1  ;;  %vm309_vm2 = vcmp.eq.f32.partialorder %v304_v1, 0.0  ;;  %vm104_vm3 = vcmp.eq.f32.partialorder %v101_v2, inf }
  0xc7   :  { %v707_v8 = vrot.slane %v706_v6, 2  ;;  %v107_v26 = vand.u32 2147483648, %v101_v2  ;;  %vm106_vm4 = vcmp.eq.f32.partialorder %v101_v2, 0.0  ;;  %s256_s12 = smul.f32 %s1798_s2, %s1744_s7 }
  0xc8   :  { %v507_v7 = vadd.f32 %v506_v5, %v505_v4  ;;  %v351_v4 = vpop.permute.xlu0 %350 }
  0xc9   :  { %v708_v9 = vadd.f32 %v707_v8, %v706_v6  ;;  %v355_v59 = vpop.permute.xlu1 %354 }
  0xca   :  { %986 = vrsqrt.f32 %v507_v7  ;;  %vm510_vm5 = vcmp.eq.f32.partialorder %v507_v7, inf  ;;  %v513_v35 = vand.u32 2147483648, %v507_v7  ;;  %vm512_vm6 = vcmp.eq.f32.partialorder %v507_v7, 0.0 }
  0xcb   :  { %v709_v10 = vrot.slane %v708_v9, 1 }
  0xcd   :  { %v710_v11 = vadd.f32 %v709_v10, %v708_v9 }
  0xce   :  { %v554_v10 = vpop.permute.xlu1 %553 }
  0xcf   :  { %988 = vrsqrt.f32 %v710_v11  ;;  %vm713_vm7 = vcmp.eq.f32.partialorder %v710_v11, inf  ;;  %v716_v45 = vand.u32 2147483648, %v710_v11  ;;  %vm715_vm8 = vcmp.eq.f32.partialorder %v710_v11, 0.0 }
  0xd2   :  { %v983_v12 = vpop.eup %982 }
  0xd3   :  { %v985_v13 = vpop.eup %984  ;;  %v306_v15 = vmul.f32 %v983_v12, %v304_v1  ;;  %v722_v12 = vstv %s1274_s17 }
  0xd4   :  { %v103_v21 = vmul.f32 %v985_v13, %v101_v2 }
  0xd5   :  { %v308_v23 = vsel %vm307_vm1, %v304_v1, %v306_v15 }
  0xd6   :  { %v311_v27 = vsel %vm309_vm2, %v310_v20, %v308_v23  ;;  %v105_v28 = vsel %vm104_vm3, %v101_v2, %v103_v21  ;;  %v519_v2 = vstv %s1270_s15  ;;  %s1845_s15 = sld [smem:[#allocation7 + $0xb]] }
  0xd7   :  { %v313_v29 = vadd.f32 %v312_v16, %v311_v27  ;;  %v108_v30 = vsel %vm106_vm4, %v107_v26, %v105_v28  ;;  %v987_v31 = vpop.eup %986  ;;  %v558_v27 = vpop.permute.xlu0 %557 }
  0xd8   :  { %v110_v32 = vadd.f32 %v109_v22, %v108_v30  ;;  %v509_v33 = vmul.f32 %v987_v31, %v507_v7 }
  0xd9   :  { %990 = vrcp.f32 %v313_v29 }
  0xda   :  { %992 = vrcp.f32 %v110_v32  ;;  %v511_v38 = vsel %vm510_vm5, %v507_v7, %v509_v33 }
  0xdb   :  { %v514_v39 = vsel %vm512_vm6, %v513_v35, %v511_v38 }
  0xdc   :  { %v516_v40 = vadd.f32 %v515_v34, %v514_v39  ;;  %v989_v42 = vpop.eup %988  ;;  %s865_s17 = smul.f32 %s1845_s15, %s1808_s11 }
  0xdd   :  { %v712_v43 = vmul.f32 %v989_v42, %v710_v11 }
  0xde   :  { %994 = vrcp.f32 %v516_v40  ;;  %v757_v40 = vpop.permute.xlu1 %756 }
  0xdf   :  { %v714_v46 = vsel %vm713_vm7, %v710_v11, %v712_v43 }
  0xe0   :  { %v717_v47 = vsel %vm715_vm8, %v716_v45, %v714_v46 }
  0xe1   :  { %v719_v52 = vadd.f32 %v718_v44, %v717_v47 }
  0xe3   :  { %996 = vrcp.f32 %v719_v52 }
  0xe6   :  { %v1352_v56 = vpop.eup %990 }
  0xe7   :  { %v993_v57 = vpop.eup %992  ;;  %v1355_v58 = vmul.f32 %v1352_v56, %v316_v51  ;;  %v1358_v60 = vmul.f32 %v1352_v56, %v330_v53 }
  0xe8   :  { %v1360_v61 = vmul.f32 %v993_v57, %v113_v54  ;;  %v128_v62 = vmul.f32 %v993_v57, %v127_v55 }
  0xe9   :  { %v344_v63 = vmul.f32 %v1355_v58, %v1301_v24  ;;  %v343_v0 = vmul.f32 %v1355_v58, %v1285_v17 }
  0xea   :  { %v141_v1 = vmul.f32 %v1360_v61, %v1304_v25  ;;  %v140_v3 = vmul.f32 %v1360_v61, %v1288_v18  ;;  %v115_v5 = vadd.f32 1.0, %v1360_v61  ;;  %v1378_v24 = vmul.f32 %v993_v57, %v128_v62 }
  0xeb   :  { %v1373_v6 = vadd.f32 %v344_v63, %v1290_v19  ;;  %v1376_v7 = vadd.f32 %v343_v0, %v1282_v14  ;;  %v1380_v17 = vpop.eup %994  ;;  %v118_v42 = vmul.f32 -0.5, %v1360_v61 }
  0xec   :  { %v1383_v25 = vadd.f32 %v140_v3, %v1282_v14  ;;  %v1386_v8 = vadd.f32 %v141_v1, %v1290_v19  ;;  %998 = vlog2.f32 %v115_v5  ;;  %v1389_v18 = vmul.f32 %v1380_v17, %v519_v2  ;;  %v761_v3 = vpop.permute.xlu1 %760 }
  0xed   :  { %v1392_v9 = vsub.f32 %v1373_v6, %v355_v59  ;;  %v1395_v11 = vsub.f32 %v1376_v7, %v351_v4  ;;  %v130_v28 = vadd.f32 1.0, %v1378_v24  ;;  %v119_v59 = vadd.f32 1.0, %v118_v42 }
  0xee   :  { %v1399_v13 = vsub.f32 %v1383_v25, %v148_v41  ;;  %v1402_v15 = vsub.f32 %v1386_v8, %v152_v48  ;;  %v546_v16 = vmul.f32 %v1389_v18, %v1318_v37  ;;  %v547_v22 = vmul.f32 %v1389_v18, %v1315_v36 }
  0xef   :  { %v360_v20 = vmul.f32 %v1392_v9, %v1392_v9  ;;  %v359_v21 = vmul.f32 %v1395_v11, %v1395_v11  ;;  %v318_v37 = vadd.f32 1.0, %v1355_v58  ;;  %1000 = vlog2.f32 %v130_v28 }
  0xf0   :  { %v156_v23 = vmul.f32 %v1399_v13, %v1399_v13  ;;  %v157_v26 = vmul.f32 %v1402_v15, %v1402_v15  ;;  %v1420_v30 = vadd.f32 %v546_v16, %v1282_v14  ;;  %v1424_v36 = vadd.f32 %v547_v22, %v1290_v19  ;;  %v1428_v35 = vpop.eup %996 }
  0xf1   :  { %v362_v29 = vsel %vm92_vm0, %v360_v20, 0.0  ;;  %v361_v31 = vsel %vm92_vm0, %v359_v21, 0.0  ;;  %v1438_v43 = vmul.f32 %v1428_v35, %v722_v12  ;;  %v121_v48 = vand.u32 2147483647, %v1360_v61 }
  0xf2   :  { %v158_v32 = vsel %vm92_vm0, %v156_v23, 0.0  ;;  %v159_v33 = vsel %vm92_vm0, %v157_v26, 0.0  ;;  %v363_v34 = vadd.f32 %v362_v29, %v361_v31  ;;  %v1431_v39 = vsub.f32 %v1420_v30, %v554_v10 }
  0xf3   :  { %v160_v38 = vadd.f32 %v159_v33, %v158_v32  ;;  %v1434_v41 = vsub.f32 %v1424_v36, %v558_v27  ;;  %v750_v51 = vmul.f32 %v1438_v43, %v1332_v50  ;;  %v749_v53 = vmul.f32 %v1438_v43, %v1329_v49 }
  0xf4   :  { %v364_v44 = vrot.slane %v363_v34, 4  ;;  %v562_v46 = vmul.f32 %v1431_v39, %v1431_v39  ;;  %1002 = vlog2.f32 %v318_v37  ;;  %v133_v49 = vmul.f32 -0.5, %v1378_v24 }
  0xf5   :  { %v161_v45 = vrot.slane %v160_v38, 4  ;;  %v563_v47 = vmul.f32 %v1434_v41, %v1434_v41  ;;  %v1452_v63 = vadd.f32 %v749_v53, %v1282_v14  ;;  %v1455_v1 = vadd.f32 %v750_v51, %v1290_v19 }
  0xf6   :  { %v365_v52 = vadd.f32 %v364_v44, %v363_v34  ;;  %v564_v55 = vsel %vm92_vm0, %v562_v46, 0.0  ;;  %v1460_v4 = vmul.f32 %v1352_v56, %v1358_v60  ;;  %v120_v20 = vmul.f32 %v119_v59, %v1360_v61 }
  0xf7   :  { %v162_v54 = vadd.f32 %v161_v45, %v160_v38  ;;  %v565_v57 = vsel %vm92_vm0, %v563_v47, 0.0  ;;  %v1463_v10 = vsub.f32 %v1452_v63, %v757_v40  ;;  %v1466_v14 = vsub.f32 %v1455_v1, %v761_v3 }
  0xf8   :  { %v366_v62 = vrot.slane %v365_v52, 2  ;;  %v566_v0 = vadd.f32 %v565_v57, %v564_v55  ;;  %vm1469_vm9 = vcmp.lt.f32.partialorder %v121_v48, 0.0004427343  ;;  %v134_v28 = vadd.f32 1.0, %v133_v49 }
  0xf9   :  { %v999_v50 = vpop.eup %998  ;;  %v163_v2 = vrot.slane %v162_v54, 2  ;;  %v765_v56 = vmul.f32 %v1463_v10, %v1463_v10  ;;  %v766_v23 = vmul.f32 %v1466_v14, %v1466_v14  ;;  %v333_v37 = vadd.f32 1.0, %v1460_v4 }
  0xfa   :  { %v367_v5 = vadd.f32 %v366_v62, %v365_v52  ;;  %v567_v12 = vrot.slane %v566_v0, 4  ;;  %v117_v19 = vmul.f32 0.6931472, %v999_v50  ;;  %v136_v40 = vand.u32 2147483647, %v1378_v24 }
  0xfb   :  { %v164_v16 = vadd.f32 %v163_v2, %v162_v54  ;;  %v767_v29 = vsel %vm92_vm0, %v765_v56, 0.0  ;;  %v768_v32 = vsel %vm92_vm0, %v766_v23, 0.0  ;;  %1004 = vlog2.f32 %v333_v37 }
  0xfc   :  { %v368_v22 = vrot.slane %v367_v5, 1  ;;  %v568_v60 = vadd.f32 %v567_v12, %v566_v0  ;;  %v123_v27 = vsel %vm1469_vm9, %v120_v20, %v117_v19  ;;  %v1001_v33 = vpop.eup %1000  ;;  %v769_v38 = vadd.f32 %v768_v32, %v767_v29 }
  0xfd   :  { %v165_v26 = vrot.slane %v164_v16, 1  ;;  %v321_v42 = vmul.f32 -0.5, %v1355_v58  ;;  %v124_v44 = vmul.f32 15.0, %v123_v27  ;;  %v132_v47 = vmul.f32 0.6931472, %v1001_v33 }
  0xfe   :  { %v1480_v61 = vadd.f32 %v368_v22, %v367_v5  ;;  %v569_v31 = vrot.slane %v568_v60, 2  ;;  %v770_v46 = vrot.slane %v769_v38, 4  ;;  %v135_v48 = vmul.f32 %v134_v28, %v1378_v24 }
  0xff   :  { %v1484_v34 = vadd.f32 %v165_v26, %v164_v16  ;;  %vm137_vm10 = vcmp.lt.f32.partialorder %v136_v40, 0.0004427343  ;;  %v521_v52 = vadd.f32 1.0, %v1389_v18  ;;  %v533_v53 = vstv %s532_s18  ;;  %s1208_s18 = smov [#allocation11]  }
 0x100   :  { %1006 = vrsqrt.f32 %v1480_v61  ;;  %v570_v45 = vadd.f32 %v569_v31, %v568_v60  ;;  %v771_v55 = vadd.f32 %v770_v46, %v769_v38  ;;  %v138_v57 = vsel %vm137_vm10, %v135_v48, %v132_v47  ;;  %s892_s19 = sshll.u32 %s1208_s18, 4  ;;  %s893_s19 = int_to_ptr.vmem [resolvable:$true] %s892_s19 }
 0x101   :  { %1008 = vrsqrt.f32 %v1484_v34  ;;  %v1003_v51 = vpop.eup %1002  ;;  %v322_v59 = vadd.f32 1.0, %v321_v42  ;;  %v1497_v62 = vadd.f32 %v138_v57, %v124_v44  ;;  %v324_v0 = vand.u32 2147483647, %v1355_v58  ;;  %p1143_p2 = scmp.lt.s32.totalorder %s893_s19, %s893_s19 }
 0x102   :  { %v571_v54 = vrot.slane %v570_v45, 1  ;;  %v336_v24 = vmul.f32 -0.5, %v1460_v4  ;;  %v772_v2 = vrot.slane %v771_v55, 2  ;;  %v320_v3 = vmul.f32 0.6931472, %v1003_v51 }
 0x103   :  { %1010 = vlog2.f32 %v521_v52  ;;  %v534_v49 = vmul.f32 %v1380_v17, %v533_v53  ;;  %v724_v5 = vadd.f32 1.0, %v1438_v43  ;;  %v736_v12 = vstv %s735_s20  ;;  %s1138_s20 = scalar_lea.vmem %s893_s19, 1024 }
 0x104   :  { %v1501_v50 = vadd.f32 %v571_v54, %v570_v45  ;;  %v174_v16 = vstv %s1487_s24  ;;  %v377_v19 = vstv %s1294_s22  ;;  %v323_v20 = vmul.f32 %v322_v59, %v1355_v58  ;;  %p1139_p1 = scmp.ne.s32.totalorder %s893_s19, %s1138_s20  ;;  %p1144_p3 = scmp.lt.s32.totalorder %s1138_s20, %s1138_s20 }
 0x105   :  { %vm372_vm11 = vcmp.eq.f32.partialorder %v1480_v61, inf  ;;  %v773_v21 = vadd.f32 %v772_v2, %v771_v55  ;;  %vm1513_vm12 = vcmp.lt.f32.partialorder %v324_v0, 0.0004427343  ;;  %v1518_v56 = vmul.f32 %v1380_v17, %v534_v49 }
 0x106   :  { %1012 = vrsqrt.f32 %v1501_v50  ;;  %v326_v60 = vsel %vm1513_vm12, %v323_v20, %v320_v3  ;;  %v337_v23 = vadd.f32 1.0, %v336_v24  ;;  %v737_v26 = vmul.f32 %v1428_v35, %v736_v12  ;;  %p1145_p4 = por %p1144_p3, %p1143_p2 }
 0x107   :  { %1014 = vlog2.f32 %v724_v5  ;;  %vm374_vm13 = vcmp.eq.f32.partialorder %v1480_v61, 0.0  ;;  %v774_v58 = vrot.slane %v773_v21, 1  ;;  %v339_v27 = vand.u32 2147483647, %v1460_v4 }
 0x108   :  { %v536_v28 = vadd.f32 1.0, %v1518_v56  ;;  %v1005_v37 = vpop.eup %1004  ;;  %vm169_vm14 = vcmp.eq.f32.partialorder %v1484_v34, inf  ;;  %v375_v17 = vand.u32 2147483648, %v1480_v61  ;;  %v524_v29 = vmul.f32 -0.5, %v1389_v18  ;;  %p1146_p5 = pnand %p1145_p4, %p1139_p1 }
 0x109   :  { %v1530_v31 = vmul.f32 %v1428_v35, %v737_v26  ;;  %v1534_v33 = vadd.f32 %v774_v58, %v773_v21  ;;  %v327_v38 = vmul.f32 15.0, %v326_v60  ;;  %v335_v40 = vmul.f32 0.6931472, %v1005_v37 }
 0x10a   :  { %1016 = vlog2.f32 %v536_v28  ;;  %vm171_vm15 = vcmp.eq.f32.partialorder %v1484_v34, 0.0  ;;  %v338_v45 = vmul.f32 %v337_v23, %v1460_v4  ;;  %v172_v47 = vand.u32 2147483648, %v1484_v34 }
 0x10b   :  { %v739_v46 = vadd.f32 1.0, %v1530_v31  ;;  %1018 = vrsqrt.f32 %v1534_v33  ;;  %vm340_vm1 = vcmp.lt.f32.partialorder %v339_v27, 0.0004427343  ;;  %v525_v52 = vadd.f32 1.0, %v524_v29 }
 0x10c   :  { %v341_v51 = vsel %vm340_vm1, %v338_v45, %v335_v40  ;;  %v727_v53 = vmul.f32 -0.5, %v1438_v43  ;;  %v527_v0 = vand.u32 2147483647, %v1389_v18  ;;  %v539_v3 = vmul.f32 -0.5, %v1518_v56 }
 0x10d   :  { %v1007_v32 = vpop.eup %1006  ;;  %v1552_v55 = vadd.f32 %v341_v51, %v327_v38  ;;  %1020 = vlog2.f32 %v739_v46  ;;  %v580_v5 = vstv %s1532_s25  ;;  %v526_v12 = vmul.f32 %v525_v52, %v1389_v18 }
 0x10e   :  { %v1009_v42 = vpop.eup %1008  ;;  %v371_v44 = vmul.f32 %v1007_v32, %v1480_v61  ;;  %vm575_vm2 = vcmp.eq.f32.partialorder %v1501_v50, inf  ;;  %vm528_vm3 = vcmp.lt.f32.partialorder %v527_v0, 0.0004427343  ;;  %v730_v20 = vand.u32 2147483647, %v1438_v43 }
 0x10f   :  { %v168_v35 = vmul.f32 %v1009_v42, %v1484_v34  ;;  %v578_v21 = vand.u32 2147483648, %v1501_v50  ;;  %v540_v60 = vadd.f32 1.0, %v539_v3  ;;  %v742_v23 = vmul.f32 -0.5, %v1530_v31 }
 0x110   :  { %v373_v48 = vsel %vm372_vm11, %v1480_v61, %v371_v44  ;;  %v1011_v24 = vpop.eup %1010  ;;  %vm577_vm4 = vcmp.eq.f32.partialorder %v1501_v50, 0.0  ;;  %v542_v18 = vand.u32 2147483647, %v1518_v56  ;;  %vm1573_vm5 = vcmp.lt.f32.partialorder %v730_v20, 0.0004427343 }
 0x111   :  { %v170_v4 = vsel %vm169_vm14, %v1484_v34, %v168_v35  ;;  %v376_v54 = vsel %vm374_vm13, %v375_v17, %v373_v48  ;;  %v523_v61 = vmul.f32 0.6931472, %v1011_v24  ;;  %v728_v34 = vadd.f32 1.0, %v727_v53 }
 0x112   :  { %v173_v57 = vsel %vm171_vm15, %v172_v47, %v170_v4  ;;  %v378_v59 = vadd.f32 %v377_v19, %v376_v54  ;;  %v743_v42 = vadd.f32 1.0, %v742_v23  ;;  %v783_v45 = vstv %s1560_s27  ;;  %v217_v47 = vpop.permute.xlu1 %216 }
 0x113   :  { %v175_v2 = vadd.f32 %v174_v16, %v173_v57  ;;  %v1013_v49 = vpop.eup %1012  ;;  %v529_v22 = vsel %vm528_vm3, %v526_v12, %v523_v61  ;;  %v729_v28 = vmul.f32 %v728_v34, %v1438_v43  ;;  %vm543_vm6 = vcmp.lt.f32.partialorder %v542_v18, 0.0004427343  ;;  %v213_v57 = vpop.permute.xlu0 %212 }
 0x114   :  { %1022 = vrcp.f32 %v378_v59  ;;  %v574_v19 = vmul.f32 %v1013_v49, %v1501_v50  ;;  %v1015_v16 = vpop.eup %1014  ;;  %v530_v29 = vmul.f32 15.0, %v529_v22  ;;  %v745_v43 = vand.u32 2147483647, %v1530_v31 }
 0x115   :  { %1024 = vrcp.f32 %v175_v2  ;;  %v726_v58 = vmul.f32 0.6931472, %v1015_v16  ;;  %v381_v46 = vstv %s1292_s21  ;;  %v395_v48 = vstv %s394_s23 }
 0x116   :  { %v576_v26 = vsel %vm575_vm2, %v1501_v50, %v574_v19  ;;  %v541_v50 = vmul.f32 %v540_v60, %v1518_v56  ;;  %vm778_vm7 = vcmp.eq.f32.partialorder %v1534_v33, inf  ;;  %v781_v52 = vand.u32 2147483648, %v1534_v33 }
 0x117   :  { %v579_v27 = vsel %vm577_vm4, %v578_v21, %v576_v26  ;;  %v1017_v37 = vpop.eup %1016  ;;  %v732_v40 = vsel %vm1573_vm5, %v729_v28, %v726_v58  ;;  %vm780_vm8 = vcmp.eq.f32.partialorder %v1534_v33, 0.0  ;;  %v744_v0 = vmul.f32 %v743_v42, %v1530_v31  ;;  %v416_v31 = vpop.permute.xlu1 %415 }
 0x118   :  { %v581_v17 = vadd.f32 %v580_v5, %v579_v27  ;;  %v538_v38 = vmul.f32 0.6931472, %v1017_v37  ;;  %v1019_v44 = vpop.eup %1018  ;;  %v733_v4 = vmul.f32 15.0, %v732_v40  ;;  %v178_v24 = vstv %s1557_s26  ;;  %v420_v26 = vpop.permute.xlu0 %419 }
 0x119   :  { %v777_v35 = vmul.f32 %v1019_v44, %v1534_v33  ;;  %v192_v3 = vstv %s191_s28  ;;  %vm746_vm9 = vcmp.lt.f32.partialorder %v745_v43, 0.0004427343 }
 0x11a   :  { %1026 = vrcp.f32 %v581_v17  ;;  %v544_v51 = vsel %vm543_vm6, %v541_v50, %v538_v38  ;;  %v1021_v56 = vpop.eup %1020 }
 0x11b   :  { %v1591_v53 = vadd.f32 %v544_v51, %v530_v29  ;;  %v779_v54 = vsel %vm778_vm7, %v1534_v33, %v777_v35  ;;  %v741_v59 = vmul.f32 0.6931472, %v1021_v56 }
 0x11c   :  { %v782_v2 = vsel %vm780_vm8, %v781_v52, %v779_v54  ;;  %v787_v52 = vstv %s1629_s30 }
 0x11d   :  { %v784_v49 = vadd.f32 %v783_v45, %v782_v2  ;;  %v747_v5 = vsel %vm746_vm9, %v744_v0, %v741_v59 }
 0x11e   :  { %v1601_v20 = vadd.f32 %v747_v5, %v733_v4 }
 0x11f   :  { %1028 = vrcp.f32 %v784_v49 }
 0x121   :  { %v1023_v61 = vpop.eup %1022 }
 0x122   :  { %v1025_v12 = vpop.eup %1024  ;;  %v1599_v34 = vmul.f32 %v1023_v61, %v381_v46  ;;  %v396_v19 = vmul.f32 %v1023_v61, %v395_v48 }
 0x123   :  { %v1603_v33 = vmul.f32 %v1025_v12, %v178_v24  ;;  %v193_v16 = vmul.f32 %v1025_v12, %v192_v3 }
 0x124   :  { %v408_v21 = vmul.f32 %v1599_v34, %v1395_v11  ;;  %v409_v22 = vmul.f32 %v1599_v34, %v1392_v9  ;;  %v584_v11 = vstv %s1597_s29  ;;  %v383_v44 = vadd.f32 1.0, %v1599_v34 }
 0x125   :  { %v206_v60 = vmul.f32 %v1603_v33, %v1402_v15  ;;  %v205_v23 = vmul.f32 %v1603_v33, %v1399_v13  ;;  %v180_v18 = vadd.f32 1.0, %v1603_v33  ;;  %v1620_v28 = vmul.f32 %v1025_v12, %v193_v16 }
 0x126   :  { %v1615_v58 = vadd.f32 %v408_v21, %v1376_v7  ;;  %v1618_v27 = vadd.f32 %v409_v22, %v1373_v6  ;;  %v183_v42 = vmul.f32 -0.5, %v1603_v33  ;;  %v186_v56 = vand.u32 2147483647, %v1603_v33 }
 0x127   :  { %v1624_v9 = vadd.f32 %v206_v60, %v1386_v8  ;;  %v1627_v15 = vadd.f32 %v205_v23, %v1383_v25  ;;  %1030 = vlog2.f32 %v180_v18  ;;  %v195_v6 = vadd.f32 1.0, %v1620_v28  ;;  %v1638_v37 = vpop.eup %1026  ;;  %v619_v25 = vpop.permute.xlu1 %618 }
 0x128   :  { %v1632_v13 = vsub.f32 %v1615_v58, %v416_v31  ;;  %v1635_v7 = vsub.f32 %v1618_v27, %v420_v26  ;;  %v1647_v29 = vmul.f32 %v1638_v37, %v584_v11  ;;  %v386_v0 = vmul.f32 -0.5, %v1599_v34 }
 0x129   :  { %v1641_v17 = vsub.f32 %v1624_v9, %v217_v47  ;;  %v1644_v8 = vsub.f32 %v1627_v15, %v213_v57  ;;  %1032 = vlog2.f32 %v195_v6  ;;  %vm1689_vm10 = vcmp.lt.f32.partialorder %v186_v56, 0.0004427343 }
 0x12a   :  { %v424_v32 = vmul.f32 %v1632_v13, %v1632_v13  ;;  %v425_v38 = vmul.f32 %v1635_v7, %v1635_v7  ;;  %v612_v45 = vmul.f32 %v1647_v29, %v1434_v41  ;;  %v611_v46 = vmul.f32 %v1647_v29, %v1431_v39 }
 0x12b   :  { %v222_v50 = vmul.f32 %v1641_v17, %v1641_v17  ;;  %v221_v40 = vmul.f32 %v1644_v8, %v1644_v8  ;;  %v623_v59 = vpop.permute.xlu1 %622  ;;  %v184_v39 = vadd.f32 1.0, %v183_v42  ;;  %1034 = vlog2.f32 %v383_v44 }
 0x12c   :  { %v426_v43 = vsel %vm92_vm0, %v424_v32, 0.0  ;;  %v427_v35 = vsel %vm92_vm0, %v425_v38, 0.0  ;;  %v1670_v54 = vadd.f32 %v611_v46, %v1420_v30  ;;  %v1673_v41 = vadd.f32 %v612_v45, %v1424_v36  ;;  %v1676_v24 = vpop.eup %1028  ;;  %v822_v38 = vpop.permute.xlu0 %821 }
 0x12d   :  { %v224_v47 = vsel %vm92_vm0, %v222_v50, 0.0  ;;  %v223_v48 = vsel %vm92_vm0, %v221_v40, 0.0  ;;  %v428_v51 = vadd.f32 %v427_v35, %v426_v43  ;;  %v1684_v30 = vmul.f32 %v1023_v61, %v396_v19 }
 0x12e   :  { %v225_v4 = vadd.f32 %v224_v47, %v223_v48  ;;  %v1679_v3 = vsub.f32 %v1670_v54, %v619_v25  ;;  %v1682_v49 = vsub.f32 %v1673_v41, %v623_v59  ;;  %v1687_v36 = vmul.f32 %v1676_v24, %v787_v52 }
 0x12f   :  { %v429_v57 = vrot.slane %v428_v51, 4  ;;  %v198_v31 = vmul.f32 -0.5, %v1620_v28  ;;  %v398_v61 = vadd.f32 1.0, %v1684_v30  ;;  %v185_v26 = vmul.f32 %v184_v39, %v1603_v33  ;;  %v826_v32 = vpop.permute.xlu1 %825 }
 0x130   :  { %v226_v2 = vrot.slane %v225_v4, 4  ;;  %v627_v21 = vmul.f32 %v1679_v3, %v1679_v3  ;;  %v628_v22 = vmul.f32 %v1682_v49, %v1682_v49  ;;  %v815_v19 = vmul.f32 %v1687_v36, %v1466_v14 }
 0x131   :  { %v430_v5 = vadd.f32 %v429_v57, %v428_v51  ;;  %v814_v23 = vmul.f32 %v1687_v36, %v1463_v10  ;;  %1036 = vlog2.f32 %v398_v61  ;;  %v199_v44 = vadd.f32 1.0, %v198_v31 }
 0x132   :  { %v227_v16 = vadd.f32 %v226_v2, %v225_v4  ;;  %v629_v6 = vsel %vm92_vm0, %v627_v21, 0.0  ;;  %v630_v25 = vsel %vm92_vm0, %v628_v22, 0.0  ;;  %v1707_v14 = vadd.f32 %v815_v19, %v1455_v1 }
 0x133   :  { %v431_v60 = vrot.slane %v430_v5, 2  ;;  %v631_v40 = vadd.f32 %v630_v25, %v629_v6  ;;  %v1710_v10 = vadd.f32 %v814_v23, %v1452_v63  ;;  %v201_v45 = vand.u32 2147483647, %v1620_v28 }
 0x134   :  { %v1031_v18 = vpop.eup %1030  ;;  %v228_v11 = vrot.slane %v227_v16, 2  ;;  %v1714_v47 = vsub.f32 %v1707_v14, %v826_v32  ;;  %v387_v51 = vadd.f32 1.0, %v386_v0  ;;  %v389_v56 = vand.u32 2147483647, %v1599_v34 }
 0x135   :  { %v432_v50 = vadd.f32 %v431_v60, %v430_v5  ;;  %v182_v42 = vmul.f32 0.6931472, %v1031_v18  ;;  %v632_v35 = vrot.slane %v631_v40, 4  ;;  %v1717_v48 = vsub.f32 %v1710_v10, %v822_v38 }
 0x136   :  { %v229_v33 = vadd.f32 %v228_v11, %v227_v16  ;;  %v1033_v43 = vpop.eup %1032  ;;  %v831_v57 = vmul.f32 %v1714_v47, %v1714_v47  ;;  %v200_v12 = vmul.f32 %v199_v44, %v1620_v28  ;;  %v401_v0 = vmul.f32 -0.5, %v1684_v30 }
 0x137   :  { %v433_v46 = vrot.slane %v432_v50, 1  ;;  %v188_v63 = vsel %vm1689_vm10, %v185_v26, %v182_v42  ;;  %v633_v4 = vadd.f32 %v632_v35, %v631_v40  ;;  %v830_v59 = vmul.f32 %v1717_v48, %v1717_v48 }
 0x138   :  { %v230_v1 = vrot.slane %v229_v33, 1  ;;  %v189_v2 = vmul.f32 15.0, %v188_v63  ;;  %v197_v5 = vmul.f32 0.6931472, %v1033_v43  ;;  %v598_v31 = vstv %s597_s6  ;;  %v1035_v16 = vpop.eup %1034 }
 0x139   :  { %v1724_v52 = vadd.f32 %v433_v46, %v432_v50  ;;  %vm202_vm11 = vcmp.lt.f32.partialorder %v201_v45, 0.0004427343  ;;  %v388_v21 = vmul.f32 %v387_v51, %v1599_v34  ;;  %vm1737_vm12 = vcmp.lt.f32.partialorder %v389_v56, 0.0004427343 }
 0x13a   :  { %v1730_v39 = vadd.f32 %v230_v1, %v229_v33  ;;  %v634_v61 = vrot.slane %v633_v4, 2  ;;  %v833_v19 = vsel %vm92_vm0, %v831_v57, 0.0  ;;  %v832_v60 = vsel %vm92_vm0, %v830_v59, 0.0 }
 0x13b   :  { %1038 = vrsqrt.f32 %v1724_v52  ;;  %v190_v28 = vadd.f32 %v189_v2, %v1497_v62  ;;  %v834_v23 = vadd.f32 %v833_v19, %v832_v60  ;;  %v203_v26 = vsel %vm202_vm11, %v200_v12, %v197_v5 }
 0x13c   :  { %1040 = vrsqrt.f32 %v1730_v39  ;;  %v385_v18 = vmul.f32 0.6931472, %v1035_v16  ;;  %v586_v34 = vadd.f32 1.0, %v1647_v29  ;;  %v635_v11 = vadd.f32 %v634_v61, %v633_v4 }
 0x13d   :  { %v1749_v6 = vadd.f32 %v203_v26, %v190_v28  ;;  %v402_v25 = vadd.f32 1.0, %v401_v0  ;;  %v599_v32 = vmul.f32 %v1638_v37, %v598_v31  ;;  %v835_v38 = vrot.slane %v834_v23, 4 }
 0x13e   :  { %v391_v50 = vsel %vm1737_vm12, %v388_v21, %v385_v18  ;;  %v404_v62 = vand.u32 2147483647, %v1684_v30  ;;  %1042 = vlog2.f32 %v586_v34  ;;  %v1037_v40 = vpop.eup %1036  ;;  %v636_v33 = vrot.slane %v635_v11, 1 }
 0x13f   :  { %v392_v42 = vmul.f32 15.0, %v391_v50  ;;  %v1758_v44 = vmul.f32 %v1638_v37, %v599_v32  ;;  %v836_v45 = vadd.f32 %v835_v38, %v834_v23  ;;  %v400_v43 = vmul.f32 0.6931472, %v1037_v40 }
 0x140   :  { %v789_v46 = vadd.f32 1.0, %v1687_v36  ;;  %v1761_v35 = vadd.f32 %v636_v33, %v635_v11  ;;  %v403_v63 = vmul.f32 %v402_v25, %v1684_v30  ;;  %vm405_vm13 = vcmp.lt.f32.partialorder %v404_v62, 0.0004427343 }
 0x141   :  { %v393_v1 = vadd.f32 %v392_v42, %v1552_v55  ;;  %v601_v51 = vadd.f32 1.0, %v1758_v44  ;;  %v837_v56 = vrot.slane %v836_v45, 2  ;;  %v801_v4 = vstv %s800_s9 }
 0x142   :  { %1044 = vlog2.f32 %v789_v46  ;;  %v406_v37 = vsel %vm405_vm13, %v403_v63, %v400_v43  ;;  %v589_v57 = vmul.f32 -0.5, %v1647_v29  ;;  %v239_v5 = vstv %s1744_s7 }
 0x143   :  { %1046 = vrsqrt.f32 %v1761_v35  ;;  %v838_v59 = vadd.f32 %v837_v56, %v836_v45  ;;  %v1768_v2 = vadd.f32 %v406_v37, %v393_v1  ;;  %v442_v12 = vstv %s1747_s8 }
 0x144   :  { %1048 = vlog2.f32 %v601_v51  ;;  %v802_v55 = vmul.f32 %v1676_v24, %v801_v4  ;;  %vm437_vm14 = vcmp.eq.f32.partialorder %v1724_v52, inf  ;;  %vm439_vm15 = vcmp.eq.f32.partialorder %v1724_v52, 0.0 }
 0x145   :  { %v440_v0 = vand.u32 2147483648, %v1724_v52  ;;  %v839_v31 = vrot.slane %v838_v59, 1  ;;  %vm234_vm1 = vcmp.eq.f32.partialorder %v1730_v39, inf  ;;  %v590_v22 = vadd.f32 1.0, %v589_v57 }
 0x146   :  { %v1779_v61 = vmul.f32 %v1676_v24, %v802_v55  ;;  %vm236_vm2 = vcmp.eq.f32.partialorder %v1730_v39, 0.0  ;;  %v792_v28 = vmul.f32 -0.5, %v1687_v36  ;;  %v237_v23 = vand.u32 2147483648, %v1730_v39 }
 0x147   :  { %v1785_v60 = vadd.f32 %v839_v31, %v838_v59  ;;  %v592_v18 = vand.u32 2147483647, %v1647_v29  ;;  %v604_v25 = vmul.f32 -0.5, %v1758_v44  ;;  %v591_v62 = vmul.f32 %v590_v22, %v1647_v29 }
 0x148   :  { %v1039_v30 = vpop.eup %1038  ;;  %v804_v34 = vadd.f32 1.0, %v1779_v61  ;;  %v793_v42 = vadd.f32 1.0, %v792_v28  ;;  %v607_v29 = vand.u32 2147483647, %v1758_v44  ;;  %v645_v63 = vstv %s1783_s10 }
 0x149   :  { %v1041_v16 = vpop.eup %1040  ;;  %v436_v21 = vmul.f32 %v1039_v30, %v1724_v52  ;;  %1050 = vrsqrt.f32 %v1785_v60  ;;  %vm593_vm3 = vcmp.lt.f32.partialorder %v592_v18, 0.0004427343  ;;  %v605_v45 = vadd.f32 1.0, %v604_v25 }
 0x14a   :  { %v233_v19 = vmul.f32 %v1041_v16, %v1730_v39  ;;  %1052 = vlog2.f32 %v804_v34  ;;  %v794_v56 = vmul.f32 %v793_v42, %v1687_v36  ;;  %vm640_vm4 = vcmp.eq.f32.partialorder %v1761_v35, inf }
 0x14b   :  { %v438_v26 = vsel %vm437_vm14, %v1724_v52, %v436_v21  ;;  %v1043_v32 = vpop.eup %1042  ;;  %v795_v52 = vand.u32 2147483647, %v1687_v36  ;;  %v643_v59 = vand.u32 2147483648, %v1761_v35  ;;  %vm642_vm6 = vcmp.eq.f32.partialorder %v1761_v35, 0.0 }
 0x14c   :  { %v235_v24 = vsel %vm234_vm1, %v1730_v39, %v233_v19  ;;  %v441_v11 = vsel %vm439_vm15, %v440_v0, %v438_v26  ;;  %v588_v33 = vmul.f32 0.6931472, %v1043_v32  ;;  %vm608_vm7 = vcmp.lt.f32.partialorder %v607_v29, 0.0004427343 }
 0x14d   :  { %v238_v38 = vsel %vm236_vm2, %v237_v23, %v235_v24  ;;  %v443_v50 = vadd.f32 %v442_v12, %v441_v11  ;;  %vm796_vm5 = vcmp.lt.f32.partialorder %v795_v52, 0.0004427343  ;;  %v606_v12 = vmul.f32 %v605_v45, %v1758_v44 }
 0x14e   :  { %v240_v40 = vadd.f32 %v239_v5, %v238_v38  ;;  %v594_v39 = vsel %vm593_vm3, %v591_v62, %v588_v33  ;;  %v807_v44 = vmul.f32 -0.5, %v1779_v61  ;;  %v243_v19 = vstv %s1798_s2 }
 0x14f   :  { %1054 = vrcp.f32 %v443_v50  ;;  %v1045_v43 = vpop.eup %1044  ;;  %v595_v46 = vmul.f32 15.0, %v594_v39  ;;  %v848_v26 = vstv %s1808_s11  ;;  %vm843_vm8 = vcmp.eq.f32.partialorder %v1785_v60, inf }
 0x150   :  { %1056 = vrcp.f32 %v240_v40  ;;  %v1047_v1 = vpop.eup %1046  ;;  %v791_v51 = vmul.f32 0.6931472, %v1045_v43  ;;  %v846_v18 = vand.u32 2147483648, %v1785_v60  ;;  %v257_v34 = vstv %s256_s12 }
 0x151   :  { %v1049_v4 = vpop.eup %1048  ;;  %v639_v37 = vmul.f32 %v1047_v1, %v1761_v35  ;;  %v596_v57 = vadd.f32 %v595_v46, %v1591_v53  ;;  %vm845_vm9 = vcmp.eq.f32.partialorder %v1785_v60, 0.0  ;;  %v460_v38 = vstv %s459_s14 }
 0x152   :  { %v603_v5 = vmul.f32 0.6931472, %v1049_v4  ;;  %v797_v36 = vsel %vm796_vm5, %v794_v56, %v791_v51  ;;  %v808_v50 = vadd.f32 1.0, %v807_v44  ;;  %v810_v42 = vand.u32 2147483647, %v1779_v61 }
 0x153   :  { %v641_v55 = vsel %vm640_vm4, %v1761_v35, %v639_v37  ;;  %v798_v30 = vmul.f32 15.0, %v797_v36  ;;  %v446_v35 = vstv %s1801_s3 }
 0x154   :  { %v644_v0 = vsel %vm642_vm6, %v643_v59, %v641_v55  ;;  %v609_v53 = vsel %vm608_vm7, %v606_v12, %v603_v5  ;;  %vm811_vm10 = vcmp.lt.f32.partialorder %v810_v42, 0.0004427343 }
 0x155   :  { %v646_v31 = vadd.f32 %v645_v63, %v644_v0  ;;  %v1817_v16 = vadd.f32 %v609_v53, %v596_v57  ;;  %v799_v21 = vadd.f32 %v798_v30, %v1601_v20  ;;  %v809_v63 = vmul.f32 %v808_v50, %v1779_v61 }
 0x156   :  { %v1051_v22 = vpop.eup %1050  ;;  %v852_v30 = vstv %s1845_s15 }
 0x157   :  { %1058 = vrcp.f32 %v646_v31  ;;  %v842_v28 = vmul.f32 %v1051_v22, %v1785_v60  ;;  %v1053_v23 = vpop.eup %1052 }
 0x158   :  { %v806_v45 = vmul.f32 0.6931472, %v1053_v23 }
 0x159   :  { %v844_v20 = vsel %vm843_vm8, %v1785_v60, %v842_v28 }
 0x15a   :  { %v847_v32 = vsel %vm845_vm9, %v846_v18, %v844_v20 }
 0x15b   :  { %v849_v40 = vadd.f32 %v848_v26, %v847_v32 }
 0x15c   :  { %v1055_v24 = vpop.eup %1054 }
 0x15d   :  { %v1057_v11 = vpop.eup %1056  ;;  %v1833_v25 = vmul.f32 %v1055_v24, %v446_v35  ;;  %1060 = vrcp.f32 %v849_v40 }
 0x15e   :  { %v1835_v62 = vmul.f32 %v1057_v11, %v243_v19  ;;  %v258_v33 = vmul.f32 %v1057_v11, %v257_v34 }
 0x15f   :  { %v474_v52 = vmul.f32 %v1833_v25, %v1635_v7  ;;  %v473_v60 = vmul.f32 %v1833_v25, %v1632_v13  ;;  %v448_v39 = vadd.f32 1.0, %v1833_v25  ;;  %v461_v13 = vmul.f32 %v1055_v24, %v460_v38 }
 0x160   :  { %v270_v43 = vmul.f32 %v1835_v62, %v1644_v8  ;;  %v271_v46 = vmul.f32 %v1835_v62, %v1641_v17  ;;  %v245_v29 = vadd.f32 1.0, %v1835_v62  ;;  %v1857_v56 = vmul.f32 %v1057_v11, %v258_v33 }
 0x161   :  { %v476_v7 = vadd.f32 %v474_v52, %v1618_v27  ;;  %v475_v1 = vadd.f32 %v473_v60, %v1615_v58  ;;  %v649_v58 = vstv %s1820_s13  ;;  %v663_v17 = vstv %s662_s16 }
 0x162   :  { %v272_v51 = vadd.f32 %v270_v43, %v1627_v15  ;;  %v273_v8 = vadd.f32 %v271_v46, %v1624_v9  ;;  %1062 = vlog2.f32 %v245_v29  ;;  %v260_v27 = vadd.f32 1.0, %v1857_v56 }
 0x163   :  { %479 = vst.msk [vmem:[#allocation11 + $0x18] sm:$0xff] %vm92_vm0, %v476_v7  ;;  %478 = vst.msk [vmem:[#allocation11 + $0x10] sm:$0xff] %vm92_vm0, %v475_v1  ;;  %1064 = vlog2.f32 %v448_v39  ;;  %v812_v9 = vsel %vm811_vm10, %v809_v63, %v806_v45  ;;  %v1865_v15 = vmul.f32 %v1055_v24, %v461_v13  ;;  %v248_v37 = vmul.f32 -0.5, %v1835_v62 }
 0x164   :  { %274 = vst.msk [vmem:[#allocation11] sm:$0xff] %vm92_vm0, %v272_v51  ;;  %275 = vst.msk [vmem:[#allocation11 + $0x8] sm:$0xff] %vm92_vm0, %v273_v8  ;;  %v1867_v61 = vadd.f32 %v812_v9, %v799_v21  ;;  %v1059_v4 = vpop.eup %1058  ;;  %1066 = vlog2.f32 %v260_v27  ;;  %v451_v55 = vmul.f32 -0.5, %v1833_v25  ;;  %v251_v53 = vand.u32 2147483647, %v1835_v62 }
 0x165   :  { %v1870_v57 = vmul.f32 %v1059_v4, %v649_v58  ;;  %v463_v59 = vadd.f32 1.0, %v1865_v15  ;;  %v664_v5 = vmul.f32 %v1059_v4, %v663_v17  ;;  %v249_v0 = vadd.f32 1.0, %v248_v37 }
 0x166   :  { %v263_v44 = vmul.f32 -0.5, %v1857_v56  ;;  %v452_v35 = vadd.f32 1.0, %v451_v55  ;;  %v454_v28 = vand.u32 2147483647, %v1833_v25  ;;  %vm1895_vm11 = vcmp.lt.f32.partialorder %v251_v53, 0.0004427343 }
 0x167   :  { %v677_v12 = vmul.f32 %v1870_v57, %v1682_v49  ;;  %v676_v36 = vmul.f32 %v1870_v57, %v1679_v3  ;;  %1068 = vlog2.f32 %v463_v59  ;;  %v651_v31 = vadd.f32 1.0, %v1870_v57 }
 0x168   :  { %v1886_v19 = vmul.f32 %v1059_v4, %v664_v5  ;;  %v866_v49 = vstv %s865_s17  ;;  %v266_v18 = vand.u32 2147483647, %v1857_v56  ;;  %v264_v24 = vadd.f32 1.0, %v263_v44 }
 0x169   :  { %v679_v21 = vadd.f32 %v677_v12, %v1673_v41  ;;  %v678_v22 = vadd.f32 %v676_v36, %v1670_v54  ;;  %1070 = vlog2.f32 %v651_v31  ;;  %v250_v54 = vmul.f32 %v249_v0, %v1835_v62 }
 0x16a   :  { %v1061_v3 = vpop.eup %1060  ;;  %v666_v23 = vadd.f32 1.0, %v1886_v19  ;;  %v466_v20 = vmul.f32 -0.5, %v1865_v15  ;;  %v453_v42 = vmul.f32 %v452_v35, %v1833_v25  ;;  %vm1907_vm12 = vcmp.lt.f32.partialorder %v454_v28, 0.0004427343 }
 0x16b   :  { %682 = vst.msk [vmem:[#allocation11 + $0x28] sm:$0xff] %vm92_vm0, %v679_v21  ;;  %681 = vst.msk [vmem:[#allocation11 + $0x20] sm:$0xff] %vm92_vm0, %v678_v22  ;;  %v1892_v26 = vmul.f32 %v1061_v3, %v852_v30  ;;  %v867_v11 = vmul.f32 %v1061_v3, %v866_v49  ;;  %v654_v60 = vmul.f32 -0.5, %v1870_v57  ;;  %v469_v29 = vand.u32 2147483647, %v1865_v15 }
 0x16c   :  { %1072 = vlog2.f32 %v666_v23  ;;  %v467_v46 = vadd.f32 1.0, %v466_v20 }
 0x16d   :  { %v879_v38 = vmul.f32 %v1892_v26, %v1717_v48  ;;  %v880_v50 = vmul.f32 %v1892_v26, %v1714_v47  ;;  %v854_v40 = vadd.f32 1.0, %v1892_v26  ;;  %v868_v1 = vmul.f32 %v1061_v3, %v867_v11 }
 0x16f   :  { %v1063_v34 = vpop.eup %1062  ;;  %v881_v39 = vadd.f32 %v879_v38, %v1710_v10  ;;  %v882_v45 = vadd.f32 %v880_v50, %v1707_v14  ;;  %1074 = vlog2.f32 %v854_v40  ;;  %v265_v14 = vmul.f32 %v264_v24, %v1857_v56 }
 0x170   :  { %v1065_v32 = vpop.eup %1064  ;;  %v247_v62 = vmul.f32 0.6931472, %v1063_v34 }
 0x171   :  { %v450_v33 = vmul.f32 0.6931472, %v1065_v32  ;;  %v1067_v48 = vpop.eup %1066  ;;  %884 = vst.msk [vmem:[#allocation11 + $0x30] sm:$0xff] %vm92_vm0, %v881_v39  ;;  %885 = vst.msk [vmem:[#allocation11 + $0x38] sm:$0xff] %vm92_vm0, %v882_v45 }
 0x172   :  { %v253_v47 = vsel %vm1895_vm11, %v250_v54, %v247_v62  ;;  %v262_v10 = vmul.f32 0.6931472, %v1067_v48 }
 0x173   :  { %v254_v43 = vmul.f32 15.0, %v253_v47  ;;  %v456_v25 = vsel %vm1907_vm12, %v453_v42, %v450_v33 }
 0x174   :  { %v457_v7 = vmul.f32 15.0, %v456_v25 }
 0x175   :  { %1149 = shalt.err (!%p1146_p5)
}
 0x176   :  { %898 = dma.vmem_to_hbm [thread:$0]  %s893_s19, 1024, %s1952_s4, [#allocation4], %s1193_s0, %s1193_s0, %s1194_s1   ;;  %v255_v13 = vadd.f32 %v254_v43, %v1749_v6  ;;  %vm267_vm0 = vcmp.lt.f32.partialorder %v266_v18, 0.0004427343  ;;  %vm276_vm13 = vcmask 516096   ;;  %v655_v63 = vadd.f32 1.0, %v654_v60  ;;  %v1069_v51 = vpop.eup %1068 }
 0x177   :  { %v268_v8 = vsel %vm267_vm0, %v265_v14, %v262_v10  ;;  %v458_v56 = vadd.f32 %v457_v7, %v1768_v2  ;;  %v669_v58 = vmul.f32 -0.5, %v1886_v19  ;;  %v869_v27 = vadd.f32 1.0, %v868_v1  ;;  %v1071_v6 = vpop.eup %1070  ;;  %s1209_s4 = smov [#allocation12]  }
 0x178   :  { %v269_v9 = vadd.f32 %v268_v8, %v255_v13  ;;  %v465_v17 = vmul.f32 0.6931472, %v1069_v51  ;;  %v468_v4 = vmul.f32 %v467_v46, %v1865_v15  ;;  %v657_v37 = vand.u32 2147483647, %v1870_v57  ;;  %s905_s0 = sshll.u32 %s1209_s4, 4  ;;  %s906_s0 = int_to_ptr.vmem [resolvable:$true] %s905_s0 }
 0x179   :  { %vm470_vm14 = vcmp.lt.f32.partialorder %v469_v29, 0.0004427343  ;;  %v857_v59 = vmul.f32 -0.5, %v1892_v26  ;;  %1076 = vlog2.f32 %v869_v27  ;;  %v653_v36 = vmul.f32 0.6931472, %v1071_v6  ;;  %v1073_v0 = vpop.eup %1072  ;;  %s1158_s1 = scalar_lea.vmem %s906_s0, 64  ;;  %p1163_p7 = scmp.lt.s32.totalorder %s906_s0, %s906_s0 }
 0x17a   :  { %277 = vst.msk [vmem:[#allocation12] sm:$0x1] %vm276_vm13, %v269_v9  ;;  %v471_v5 = vsel %vm470_vm14, %v468_v4, %v465_v17  ;;  %v656_v2 = vmul.f32 %v655_v63, %v1870_v57  ;;  %v670_v55 = vadd.f32 1.0, %v669_v58  ;;  %vm658_vm15 = vcmp.lt.f32.partialorder %v657_v37, 0.0004427343  ;;  %p1159_p6 = scmp.ne.s32.totalorder %s906_s0, %s1158_s1  ;;  %p1164_p8 = scmp.lt.s32.totalorder %s1158_s1, %s1158_s1 }
 0x17b   :  { %v472_v12 = vadd.f32 %v471_v5, %v458_v56  ;;  %v672_v30 = vand.u32 2147483647, %v1886_v19  ;;  %v858_v53 = vadd.f32 1.0, %v857_v59  ;;  %v668_v21 = vmul.f32 0.6931472, %v1073_v0 }
 0x17c   :  { %v659_v15 = vsel %vm658_vm15, %v656_v2, %v653_v36  ;;  %v860_v22 = vand.u32 2147483647, %v1892_v26  ;;  %v671_v44 = vmul.f32 %v670_v55, %v1886_v19  ;;  %v872_v49 = vmul.f32 -0.5, %v868_v1  ;;  %v1075_v3 = vpop.eup %1074  ;;  %p1165_p9 = por %p1164_p8, %p1163_p7 }
 0x17d   :  { %480 = vst.msk [vmem:[#allocation12 + $0x1] sm:$0x1] %vm276_vm13, %v472_v12  ;;  %v660_v31 = vmul.f32 15.0, %v659_v15  ;;  %vm673_vm1 = vcmp.lt.f32.partialorder %v672_v30, 0.0004427343  ;;  %v859_v23 = vmul.f32 %v858_v53, %v1892_v26 }
 0x17e   :  { %v674_v57 = vsel %vm673_vm1, %v671_v44, %v668_v21  ;;  %v856_v28 = vmul.f32 0.6931472, %v1075_v3  ;;  %vm861_vm2 = vcmp.lt.f32.partialorder %v860_v22, 0.0004427343  ;;  %v873_v18 = vadd.f32 1.0, %v872_v49  ;;  %p1166_p10 = pnand %p1165_p9, %p1159_p6 }
 0x17f   :  { %v661_v35 = vadd.f32 %v660_v31, %v1817_v16  ;;  %v875_v24 = vand.u32 2147483647, %v868_v1 }
 0x180   :  { %v862_v41 = vsel %vm861_vm2, %v859_v23, %v856_v28  ;;  %v874_v32 = vmul.f32 %v873_v18, %v868_v1 }
 0x181   :  { %v675_v54 = vadd.f32 %v674_v57, %v661_v35  ;;  %v863_v34 = vmul.f32 15.0, %v862_v41  ;;  %vm876_vm3 = vcmp.lt.f32.partialorder %v875_v24, 0.0004427343 }
 0x183   :  { %683 = vst.msk [vmem:[#allocation12 + $0x2] sm:$0x1] %vm276_vm13, %v675_v54  ;;  %v864_v19 = vadd.f32 %v863_v34, %v1867_v61 }
 0x186   :  { %v1077_v20 = vpop.eup %1076 }
 0x187   :  { %v871_v11 = vmul.f32 0.6931472, %v1077_v20 }
 0x189   :  { %v877_v16 = vsel %vm876_vm3, %v874_v32, %v871_v11 }
 0x18a   :  { %v878_v38 = vadd.f32 %v877_v16, %v864_v19 }
 0x18c   :  { %886 = vst.msk [vmem:[#allocation12 + $0x3] sm:$0x1] %vm276_vm13, %v878_v38 }
 0x18d   :  { %1169 = shalt.err (!%p1166_p10)
}
 0x18e   :  { %908 = dma.vmem_to_hbm [thread:$0]  %s906_s0, 64, %s1953_s5, [#allocation13]  }
 0x18f   :  { %1186 = dma.done.wait [#allocation4], 1024  }
 0x190   :  { %1187 = vsyncadd [#allocation4], 4294966272 }
 0x191   :  { %1188 = dma.done.wait [#allocation13], 64  }
 0x192   :  { %1189 = vsyncadd [#allocation13], 4294967232 }
 0x193   :  { %915 = vsyncpa [#allocation3], 1 }
 0x194   :  { %916 = vsyncpa [#allocation10], 1 }
 0x195   :  { %917 = vsyncpa [#allocation4], 1 }
 0x196   :  { %918 = vsyncpa [#allocation13], 1 }
 0x197   :  { %919 = vsyncpa [#allocation5], 1 }
 0x198   :  { %920 = vsyncpa [#allocation6], 1 }

</bundles_post_ra>
